<compile_context>
chip_gen: v7x
topology: tpu7x:2x2x1
jax: 0.10.0
libtpu: 0.0.40
codegen_flags: <defaults>
</compile_context>

<pallas_src>
import math

import jax
import jax.numpy as jnp
import numpy as np
from jax.experimental import pallas as pl
from jax.experimental.pallas import tpu as pltpu

TM = 256     # row tile (output rows per block)      -- grown past 128 per review
TK = 256     # contraction tile (A cols / Z rows)    -- 256 fills v6e/v7x MXU; use 128 on v5e
F_PAD = 128  # padded lane (feature / class) width


# ----------------------------------------------------------------------------
# Pallas kernel: block-CSR  activation(A_hat @ Z + b)
# ----------------------------------------------------------------------------
def _make_propagate_kernel(activation):
    def kernel(rows_ref, cols_ref, first_ref, last_ref,
               a_ref, z_ref, b_ref, out_ref, acc_ref):
        del rows_ref, cols_ref  # consumed only by the data-dependent index_maps
        s = pl.program_id(0)

        @pl.when(first_ref[s] == 1)
        def _init():
            acc_ref[...] = jnp.zeros_like(acc_ref)

        acc_ref[...] += jnp.dot(a_ref[...], z_ref[...],
                                preferred_element_type=jnp.float32)

        @pl.when(last_ref[s] == 1)
        def _finalize():
            h = acc_ref[...] + b_ref[...]          # (TM, F_PAD) f32 + (1, F_PAD)
            if activation == "relu":
                h = jnp.maximum(h, 0.0)
            out_ref[...] = h.astype(out_ref.dtype)

    return kernel


def gcn_propagate(a_blk, z_pad, b_pad, rows, cols, first, last, num_blocks, *,
                  activation=None, out_dtype=jnp.float32):
    """out = activation(A_hat @ Z + b) over the nonzero (TM, TK) blocks of A_hat."""
    nb_r, nb_c, tm, tk = a_blk.shape
    n_pad = nb_r * tm
    f_pad = z_pad.shape[1]

    def a_map(s, rows_r, cols_r, first_r, last_r):
        return (rows_r[s], cols_r[s], 0, 0)

    def z_map(s, rows_r, cols_r, first_r, last_r):
        return (cols_r[s], 0)

    def b_map(s, rows_r, cols_r, first_r, last_r):
        return (0, 0)

    def o_map(s, rows_r, cols_r, first_r, last_r):
        return (rows_r[s], 0)

    grid_spec = pltpu.PrefetchScalarGridSpec(
        num_scalar_prefetch=4,                     # rows, cols, first, last -> SMEM
        grid=(num_blocks,),                        # flat block-CSR grid over nonzero blocks
        in_specs=[
            pl.BlockSpec((None, None, tm, tk), a_map),   # contiguous A tile (bf16)
            pl.BlockSpec((tk, f_pad), z_map),            # Z tile (bf16)
            pl.BlockSpec((1, f_pad), b_map),             # bias, resident
        ],
        out_specs=pl.BlockSpec((tm, f_pad), o_map),
        scratch_shapes=[pltpu.VMEM((tm, f_pad), jnp.float32)],   # f32 accumulator
    )

    return pl.pallas_call(
        _make_propagate_kernel(activation),
        out_shape=jax.ShapeDtypeStruct((n_pad, f_pad), out_dtype),
        grid_spec=grid_spec,
        compiler_params=pltpu.CompilerParams(
            dimension_semantics=("arbitrary",),    # consecutive steps share the accumulator
            vmem_limit_bytes=32 * 1024 * 1024,     # safe on v5e/v6e/v7x
        ),
    )(rows, cols, first, last, a_blk, z_pad, b_pad)


# ----------------------------------------------------------------------------
# Host-side metadata (numpy, computed once from edge_index; no device round-trip)
# ----------------------------------------------------------------------------
def block_structure(edge_index_np, num_nodes, n_pad):
    """Flat block-CSR metadata of A_hat's nonzero (TM, TK) blocks."""
    src = np.asarray(edge_index_np[0])
    dst = np.asarray(edge_index_np[1])
    self_loops = np.arange(num_nodes)
    rows = np.concatenate([dst, self_loops])
    cols = np.concatenate([src, self_loops])
    nb_r, nb_c = n_pad // TM, n_pad // TK
    nz = np.zeros((nb_r, nb_c), dtype=bool)
    nz[rows // TM, cols // TK] = True
    for i in range(nb_r):                          # ensure every row block is emitted
        nz[i, min((i * TM) // TK, nb_c - 1)] = True
    rb, cb = np.nonzero(nz)                        # row-major -> grouped by row block
    total = int(rb.size)
    first = np.zeros(total, np.int32)
    last = np.zeros(total, np.int32)
    first[0] = 1
    last[-1] = 1
    chg = rb[1:] != rb[:-1]
    first[1:][chg] = 1
    last[:-1][chg] = 1
    return (jnp.asarray(rb.astype(np.int32)), jnp.asarray(cb.astype(np.int32)),
            jnp.asarray(first), jnp.asarray(last), total)


# ----------------------------------------------------------------------------
# Forward wrapper (jitted)
# ----------------------------------------------------------------------------
def make_gcn_forward(n, dim_out, n_pad, num_blocks):
    nb_r, nb_c = n_pad // TM, n_pad // TK

    @jax.jit
    def forward(a_hat, x, w1, b1, w2, b2, rows, cols, first, last):
        dim_in = x.shape[1]
        dim_h = w1.shape[1]

        # Pre-block A_hat into a contiguous (nb_r, nb_c, TM, TK) bf16 layout.
        a_pad = jnp.zeros((n_pad, n_pad), jnp.float32).at[:n, :n].set(a_hat)
        a_blk = (a_pad.reshape(nb_r, TM, nb_c, TK)
                 .transpose(0, 2, 1, 3)
                 .astype(jnp.bfloat16))

        x_pad = jnp.zeros((n_pad, dim_in), jnp.float32).at[:n, :].set(x)
        w1_pad = jnp.zeros((dim_in, F_PAD), jnp.float32).at[:, :dim_h].set(w1)
        b1_pad = jnp.zeros((1, F_PAD), jnp.float32).at[:, :dim_h].set(b1.reshape(1, -1))
        w2_pad = jnp.zeros((F_PAD, F_PAD), jnp.float32).at[:dim_h, :dim_out].set(w2)
        b2_pad = jnp.zeros((1, F_PAD), jnp.float32).at[:, :dim_out].set(b2.reshape(1, -1))

        # Layer 1: tiny feature transform in XLA; propagation + bias + relu in Pallas.
        z1 = jnp.dot(x_pad.astype(jnp.bfloat16), w1_pad.astype(jnp.bfloat16),
                     preferred_element_type=jnp.float32).astype(jnp.bfloat16)
        h1 = gcn_propagate(a_blk, z1, b1_pad, rows, cols, first, last, num_blocks,
                           activation="relu", out_dtype=jnp.bfloat16)

        # Layer 2: propagation + bias in Pallas; log_softmax on sliced logits in XLA.
        z2 = jnp.dot(h1, w2_pad.astype(jnp.bfloat16),
                     preferred_element_type=jnp.float32).astype(jnp.bfloat16)
        h2_pad = gcn_propagate(a_blk, z2, b2_pad, rows, cols, first, last, num_blocks,
                               activation=None, out_dtype=jnp.float32)

        h2 = h2_pad[:n, :dim_out]
        log_probs = jax.nn.log_softmax(h2, axis=1)
        return h2, log_probs

    return forward


def normalized_adjacency(edge_index, num_nodes):
    """Dense D^{-1/2} (A + I) D^{-1/2}, matching PyG gcn_norm (deduplicated)."""
    src, dst = edge_index[0], edge_index[1]
    a = jnp.zeros((num_nodes, num_nodes), jnp.float32)
    a = a.at[dst, src].set(1.0)                                      # dedup edges
    a = jnp.maximum(a, jnp.eye(num_nodes, dtype=jnp.float32))        # self-loops once
    deg = jnp.sum(a, axis=1)
    dinv = jnp.where(deg > 0, 1.0 / jnp.sqrt(deg), 0.0)
    return dinv[:, None] * a * dinv[None, :]


if __name__ == "__main__":
    # Small deterministic problem: N=400 nodes, dim_in=96, dim_h=48, dim_out=7
    N, DIM_IN, DIM_H, DIM_OUT = 400, 96, 48, 7

    key = jax.random.PRNGKey(0)
    kx, kw1, kw2 = jax.random.split(key, 3)

    x = jax.random.normal(kx, (N, DIM_IN), dtype=jnp.float32)

    # Undirected ring + two chords, stored as directed edge pairs (PyG convention).
    ring_src = np.arange(N, dtype=np.int32)
    ring_dst = (ring_src + 1) % N
    chord_a = np.array([0, 5], dtype=np.int32)
    chord_b = np.array([200, 300], dtype=np.int32)
    src = np.concatenate([ring_src, ring_dst, chord_a, chord_b])
    dst = np.concatenate([ring_dst, ring_src, chord_b, chord_a])
    edge_index_np = np.stack([src, dst], axis=0)       # (2, E) on the host
    edge_index = jnp.asarray(edge_index_np)

    # Deterministic params per GCNConv(dim_in, dim_h), GCNConv(dim_h, dim_out)
    w1 = jax.random.normal(kw1, (DIM_IN, DIM_H), dtype=jnp.float32) / jnp.sqrt(DIM_IN)
    b1 = jnp.zeros((1, DIM_H), dtype=jnp.float32)
    w2 = jax.random.normal(kw2, (DIM_H, DIM_OUT), dtype=jnp.float32) / jnp.sqrt(DIM_H)
    b2 = jnp.zeros((1, DIM_OUT), dtype=jnp.float32)

    a_hat = normalized_adjacency(edge_index, N)

    # Block-CSR metadata for A_hat, computed once on the host from edge_index.
    blk = math.lcm(TM, TK)
    n_pad = ((N + blk - 1) // blk) * blk
    rows, cols, first, last, num_blocks = block_structure(edge_index_np, N, n_pad)

    forward = make_gcn_forward(N, DIM_OUT, n_pad, num_blocks)
    h2, log_probs = forward(a_hat, x, w1, b1, w2, b2, rows, cols, first, last)
    jax.block_until_ready((h2, log_probs))

    assert h2.shape == (N, DIM_OUT)
    assert log_probs.shape == (N, DIM_OUT)
    # log_softmax rows sum to ~1 in probability space
    assert jnp.allclose(jnp.sum(jnp.exp(log_probs), axis=1), 1.0, atol=1e-3)

    # Dense f32 reference mirroring the bf16 operand rounding of the kernel path.
    a_f32 = a_hat.astype(jnp.bfloat16).astype(jnp.float32)
    xb = x.astype(jnp.bfloat16).astype(jnp.float32)
    w1b = w1.astype(jnp.bfloat16).astype(jnp.float32)
    w2b = w2.astype(jnp.bfloat16).astype(jnp.float32)
    z1r = (xb @ w1b).astype(jnp.bfloat16).astype(jnp.float32)
    h1r = jnp.maximum(a_f32 @ z1r + b1, 0.0).astype(jnp.bfloat16).astype(jnp.float32)
    z2r = (h1r @ w2b).astype(jnp.bfloat16).astype(jnp.float32)
    h2_ref = a_f32 @ z2r + b2
    lsm_ref = jax.nn.log_softmax(h2_ref, axis=1)

    err_h = float(jnp.max(jnp.abs(h2 - h2_ref)))
    err_l = float(jnp.max(jnp.abs(log_probs - lsm_ref)))
    assert err_h < 5e-2 and err_l < 5e-2, (err_h, err_l)

    print("KERNEL_OK")
</pallas_src>

<mosaic_0001>
module attributes {stable_mosaic.version = 11 : i64} {
  func.func @kernel(%arg0: i32, %arg1: memref<4xi32, #tpu.memory_space<smem>>, %arg2: memref<4xi32, #tpu.memory_space<smem>>, %arg3: memref<4xi32, #tpu.memory_space<smem>>, %arg4: memref<4xi32, #tpu.memory_space<smem>>, %arg5: memref<1x1x256x256xbf16, #tpu.memory_space<vmem>>, %arg6: memref<256x128xbf16, #tpu.memory_space<vmem>>, %arg7: memref<1x128xf32, #tpu.memory_space<vmem>>, %arg8: memref<256x128xbf16, #tpu.memory_space<vmem>>, %arg9: memref<256x128xf32, #tpu.memory_space<vmem>>) attributes {dimension_semantics = [#tpu.dimension_semantics<arbitrary>], iteration_bounds = array<i64: 4>, scalar_prefetch = 4 : i64, scratch_operands = 1 : i64, tpu.core_type = #tpu.core_type<tc>, window_params = [{transform_indices = @transform_0, window_bounds = array<i64: 1, 1, 256, 256>}, {transform_indices = @transform_1, window_bounds = array<i64: 256, 128>}, {pipeline_mode = #tpu.pipeline_mode<synchronous>, transform_indices = @transform_2, window_bounds = array<i64: 1, 128>}, {transform_indices = @transform_3, window_bounds = array<i64: 256, 128>}]} {
    %0 = arith.index_cast %arg0 : i32 to index
    %1 = memref.load %arg3[%0] : memref<4xi32, #tpu.memory_space<smem>>
    %c1_i32 = arith.constant 1 : i32
    %2 = arith.cmpi eq, %1, %c1_i32 : i32
    %3 = arith.extui %2 : i1 to i32
    %c0_i32 = arith.constant 0 : i32
    %4 = arith.cmpi ne, %3, %c0_i32 : i32
    scf.if %4 {
      %cst_11 = arith.constant 0.000000e+00 : f32
      %17 = vector.broadcast %cst_11 : f32 to vector<256x128xf32>
      %c0_12 = arith.constant 0 : index
      %c0_13 = arith.constant 0 : index
      %18 = vector.load %arg9[%c0_12, %c0_13] : memref<256x128xf32, #tpu.memory_space<vmem>>, vector<256x128xf32>
      tpu.vector_store %arg9[%c0_12, %c0_13], %17 {strides = array<i32>} : memref<256x128xf32, #tpu.memory_space<vmem>>, vector<256x128xf32>,
    } else {
    }
    %c0 = arith.constant 0 : index
    %c0_0 = arith.constant 0 : index
    %5 = vector.load %arg9[%c0, %c0_0] : memref<256x128xf32, #tpu.memory_space<vmem>>, vector<256x128xf32>
    %c0_1 = arith.constant 0 : index
    %c0_2 = arith.constant 0 : index
    %c0_3 = arith.constant 0 : index
    %c0_4 = arith.constant 0 : index
    %6 = vector.load %arg5[%c0_1, %c0_2, %c0_3, %c0_4] : memref<1x1x256x256xbf16, #tpu.memory_space<vmem>>, vector<1x1x256x256xbf16>
    %7 = vector.shape_cast %6 : vector<1x1x256x256xbf16> to vector<256x256xbf16>
    %c0_5 = arith.constant 0 : index
    %c0_6 = arith.constant 0 : index
    %8 = vector.load %arg6[%c0_5, %c0_6] : memref<256x128xbf16, #tpu.memory_space<vmem>>, vector<256x128xbf16>
    %cst = arith.constant dense<0.000000e+00> : vector<256x128xf32>
    %9 = tpu.matmul %7, %8, %cst {dimension_numbers = #tpu.dot_dimension_numbers<[1], [0], [0], [1], [0, 0, 1, 1], [], []>} : vector<256x256xbf16>, vector<256x128xbf16>, vector<256x128xf32> -> vector<256x128xf32>
    %10 = arith.addf %5, %9 : vector<256x128xf32>
    %c0_7 = arith.constant 0 : index
    %c0_8 = arith.constant 0 : index
    %11 = vector.load %arg9[%c0_7, %c0_8] : memref<256x128xf32, #tpu.memory_space<vmem>>, vector<256x128xf32>
    tpu.vector_store %arg9[%c0_7, %c0_8], %10 {strides = array<i32>} : memref<256x128xf32, #tpu.memory_space<vmem>>, vector<256x128xf32>,
    %12 = arith.index_cast %arg0 : i32 to index
    %13 = memref.load %arg4[%12] : memref<4xi32, #tpu.memory_space<smem>>
    %c1_i32_9 = arith.constant 1 : i32
    %14 = arith.cmpi eq, %13, %c1_i32_9 : i32
    %15 = arith.extui %14 : i1 to i32
    %c0_i32_10 = arith.constant 0 : i32
    %16 = arith.cmpi ne, %15, %c0_i32_10 : i32
    scf.if %16 {
      %c0_11 = arith.constant 0 : index
      %c0_12 = arith.constant 0 : index
      %17 = vector.load %arg9[%c0_11, %c0_12] : memref<256x128xf32, #tpu.memory_space<vmem>>, vector<256x128xf32>
      %c0_13 = arith.constant 0 : index
      %c0_14 = arith.constant 0 : index
      %18 = vector.load %arg7[%c0_13, %c0_14] : memref<1x128xf32, #tpu.memory_space<vmem>>, vector<1x128xf32>
      %19 = vector.broadcast %18 : vector<1x128xf32> to vector<256x128xf32>
      %20 = arith.addf %17, %19 : vector<256x128xf32>
      %cst_15 = arith.constant 0.000000e+00 : f32
      %21 = vector.broadcast %cst_15 : f32 to vector<256x128xf32>
      %22 = arith.maximumf %20, %21 : vector<256x128xf32>
      %23 = arith.truncf %22 : vector<256x128xf32> to vector<256x128xbf16>
      %c0_16 = arith.constant 0 : index
      %c0_17 = arith.constant 0 : index
      %24 = vector.load %arg8[%c0_16, %c0_17] : memref<256x128xbf16, #tpu.memory_space<vmem>>, vector<256x128xbf16>
      tpu.vector_store %arg8[%c0_16, %c0_17], %23 {strides = array<i32>} : memref<256x128xbf16, #tpu.memory_space<vmem>>, vector<256x128xbf16>,
    } else {
    }
    return
  }
  func.func @transform_0(%arg0: i32, %arg1: memref<4xi32, #tpu.memory_space<smem>>, %arg2: memref<4xi32, #tpu.memory_space<smem>>, %arg3: memref<4xi32, #tpu.memory_space<smem>>, %arg4: memref<4xi32, #tpu.memory_space<smem>>) -> (i32, i32, i32, i32) {
    %0 = arith.index_cast %arg0 : i32 to index
    %1 = memref.load %arg1[%0] : memref<4xi32, #tpu.memory_space<smem>>
    %2 = arith.index_cast %arg0 : i32 to index
    %3 = memref.load %arg2[%2] : memref<4xi32, #tpu.memory_space<smem>>
    %c0_i32 = arith.constant 0 : i32
    %c0_i32_0 = arith.constant 0 : i32
    %c0_i32_1 = arith.constant 0 : i32
    return %1, %3, %c0_i32, %c0_i32_0 : i32, i32, i32, i32
  }
  func.func @transform_1(%arg0: i32, %arg1: memref<4xi32, #tpu.memory_space<smem>>, %arg2: memref<4xi32, #tpu.memory_space<smem>>, %arg3: memref<4xi32, #tpu.memory_space<smem>>, %arg4: memref<4xi32, #tpu.memory_space<smem>>) -> (i32, i32) {
    %0 = arith.index_cast %arg0 : i32 to index
    %1 = memref.load %arg2[%0] : memref<4xi32, #tpu.memory_space<smem>>
    %c0_i32 = arith.constant 0 : i32
    %c0_i32_0 = arith.constant 0 : i32
    return %1, %c0_i32 : i32, i32
  }
  func.func @transform_2(%arg0: i32, %arg1: memref<4xi32, #tpu.memory_space<smem>>, %arg2: memref<4xi32, #tpu.memory_space<smem>>, %arg3: memref<4xi32, #tpu.memory_space<smem>>, %arg4: memref<4xi32, #tpu.memory_space<smem>>) -> (i32, i32) {
    %c0_i32 = arith.constant 0 : i32
    %c0_i32_0 = arith.constant 0 : i32
    %c0_i32_1 = arith.constant 0 : i32
    return %c0_i32, %c0_i32_0 : i32, i32
  }
  func.func @transform_3(%arg0: i32, %arg1: memref<4xi32, #tpu.memory_space<smem>>, %arg2: memref<4xi32, #tpu.memory_space<smem>>, %arg3: memref<4xi32, #tpu.memory_space<smem>>, %arg4: memref<4xi32, #tpu.memory_space<smem>>) -> (i32, i32) {
    %0 = arith.index_cast %arg0 : i32 to index
    %1 = memref.load %arg1[%0] : memref<4xi32, #tpu.memory_space<smem>>
    %c0_i32 = arith.constant 0 : i32
    %c0_i32_0 = arith.constant 0 : i32
    return %1, %c0_i32 : i32, i32
  }
}

module attributes {stable_mosaic.version = 11 : i64} {
  func.func @kernel(%arg0: i32, %arg1: memref<4xi32, #tpu.memory_space<smem>>, %arg2: memref<4xi32, #tpu.memory_space<smem>>, %arg3: memref<4xi32, #tpu.memory_space<smem>>, %arg4: memref<4xi32, #tpu.memory_space<smem>>, %arg5: memref<1x1x256x256xbf16, #tpu.memory_space<vmem>>, %arg6: memref<256x128xbf16, #tpu.memory_space<vmem>>, %arg7: memref<1x128xf32, #tpu.memory_space<vmem>>, %arg8: memref<256x128xf32, #tpu.memory_space<vmem>>, %arg9: memref<256x128xf32, #tpu.memory_space<vmem>>) attributes {dimension_semantics = [#tpu.dimension_semantics<arbitrary>], iteration_bounds = array<i64: 4>, scalar_prefetch = 4 : i64, scratch_operands = 1 : i64, tpu.core_type = #tpu.core_type<tc>, window_params = [{transform_indices = @transform_0, window_bounds = array<i64: 1, 1, 256, 256>}, {transform_indices = @transform_1, window_bounds = array<i64: 256, 128>}, {pipeline_mode = #tpu.pipeline_mode<synchronous>, transform_indices = @transform_2, window_bounds = array<i64: 1, 128>}, {transform_indices = @transform_3, window_bounds = array<i64: 256, 128>}]} {
    %0 = arith.index_cast %arg0 : i32 to index
    %1 = memref.load %arg3[%0] : memref<4xi32, #tpu.memory_space<smem>>
    %c1_i32 = arith.constant 1 : i32
    %2 = arith.cmpi eq, %1, %c1_i32 : i32
    %3 = arith.extui %2 : i1 to i32
    %c0_i32 = arith.constant 0 : i32
    %4 = arith.cmpi ne, %3, %c0_i32 : i32
    scf.if %4 {
      %cst_11 = arith.constant 0.000000e+00 : f32
      %17 = vector.broadcast %cst_11 : f32 to vector<256x128xf32>
      %c0_12 = arith.constant 0 : index
      %c0_13 = arith.constant 0 : index
      %18 = vector.load %arg9[%c0_12, %c0_13] : memref<256x128xf32, #tpu.memory_space<vmem>>, vector<256x128xf32>
      tpu.vector_store %arg9[%c0_12, %c0_13], %17 {strides = array<i32>} : memref<256x128xf32, #tpu.memory_space<vmem>>, vector<256x128xf32>,
    } else {
    }
    %c0 = arith.constant 0 : index
    %c0_0 = arith.constant 0 : index
    %5 = vector.load %arg9[%c0, %c0_0] : memref<256x128xf32, #tpu.memory_space<vmem>>, vector<256x128xf32>
    %c0_1 = arith.constant 0 : index
    %c0_2 = arith.constant 0 : index
    %c0_3 = arith.constant 0 : index
    %c0_4 = arith.constant 0 : index
    %6 = vector.load %arg5[%c0_1, %c0_2, %c0_3, %c0_4] : memref<1x1x256x256xbf16, #tpu.memory_space<vmem>>, vector<1x1x256x256xbf16>
    %7 = vector.shape_cast %6 : vector<1x1x256x256xbf16> to vector<256x256xbf16>
    %c0_5 = arith.constant 0 : index
    %c0_6 = arith.constant 0 : index
    %8 = vector.load %arg6[%c0_5, %c0_6] : memref<256x128xbf16, #tpu.memory_space<vmem>>, vector<256x128xbf16>
    %cst = arith.constant dense<0.000000e+00> : vector<256x128xf32>
    %9 = tpu.matmul %7, %8, %cst {dimension_numbers = #tpu.dot_dimension_numbers<[1], [0], [0], [1], [0, 0, 1, 1], [], []>} : vector<256x256xbf16>, vector<256x128xbf16>, vector<256x128xf32> -> vector<256x128xf32>
    %10 = arith.addf %5, %9 : vector<256x128xf32>
    %c0_7 = arith.constant 0 : index
    %c0_8 = arith.constant 0 : index
    %11 = vector.load %arg9[%c0_7, %c0_8] : memref<256x128xf32, #tpu.memory_space<vmem>>, vector<256x128xf32>
    tpu.vector_store %arg9[%c0_7, %c0_8], %10 {strides = array<i32>} : memref<256x128xf32, #tpu.memory_space<vmem>>, vector<256x128xf32>,
    %12 = arith.index_cast %arg0 : i32 to index
    %13 = memref.load %arg4[%12] : memref<4xi32, #tpu.memory_space<smem>>
    %c1_i32_9 = arith.constant 1 : i32
    %14 = arith.cmpi eq, %13, %c1_i32_9 : i32
    %15 = arith.extui %14 : i1 to i32
    %c0_i32_10 = arith.constant 0 : i32
    %16 = arith.cmpi ne, %15, %c0_i32_10 : i32
    scf.if %16 {
      %c0_11 = arith.constant 0 : index
      %c0_12 = arith.constant 0 : index
      %17 = vector.load %arg9[%c0_11, %c0_12] : memref<256x128xf32, #tpu.memory_space<vmem>>, vector<256x128xf32>
      %c0_13 = arith.constant 0 : index
      %c0_14 = arith.constant 0 : index
      %18 = vector.load %arg7[%c0_13, %c0_14] : memref<1x128xf32, #tpu.memory_space<vmem>>, vector<1x128xf32>
      %19 = vector.broadcast %18 : vector<1x128xf32> to vector<256x128xf32>
      %20 = arith.addf %17, %19 : vector<256x128xf32>
      %c0_15 = arith.constant 0 : index
      %c0_16 = arith.constant 0 : index
      %21 = vector.load %arg8[%c0_15, %c0_16] : memref<256x128xf32, #tpu.memory_space<vmem>>, vector<256x128xf32>
      tpu.vector_store %arg8[%c0_15, %c0_16], %20 {strides = array<i32>} : memref<256x128xf32, #tpu.memory_space<vmem>>, vector<256x128xf32>,
    } else {
    }
    return
  }
  func.func @transform_0(%arg0: i32, %arg1: memref<4xi32, #tpu.memory_space<smem>>, %arg2: memref<4xi32, #tpu.memory_space<smem>>, %arg3: memref<4xi32, #tpu.memory_space<smem>>, %arg4: memref<4xi32, #tpu.memory_space<smem>>) -> (i32, i32, i32, i32) {
    %0 = arith.index_cast %arg0 : i32 to index
    %1 = memref.load %arg1[%0] : memref<4xi32, #tpu.memory_space<smem>>
    %2 = arith.index_cast %arg0 : i32 to index
    %3 = memref.load %arg2[%2] : memref<4xi32, #tpu.memory_space<smem>>
    %c0_i32 = arith.constant 0 : i32
    %c0_i32_0 = arith.constant 0 : i32
    %c0_i32_1 = arith.constant 0 : i32
    return %1, %3, %c0_i32, %c0_i32_0 : i32, i32, i32, i32
  }
  func.func @transform_1(%arg0: i32, %arg1: memref<4xi32, #tpu.memory_space<smem>>, %arg2: memref<4xi32, #tpu.memory_space<smem>>, %arg3: memref<4xi32, #tpu.memory_space<smem>>, %arg4: memref<4xi32, #tpu.memory_space<smem>>) -> (i32, i32) {
    %0 = arith.index_cast %arg0 : i32 to index
    %1 = memref.load %arg2[%0] : memref<4xi32, #tpu.memory_space<smem>>
    %c0_i32 = arith.constant 0 : i32
    %c0_i32_0 = arith.constant 0 : i32
    return %1, %c0_i32 : i32, i32
  }
  func.func @transform_2(%arg0: i32, %arg1: memref<4xi32, #tpu.memory_space<smem>>, %arg2: memref<4xi32, #tpu.memory_space<smem>>, %arg3: memref<4xi32, #tpu.memory_space<smem>>, %arg4: memref<4xi32, #tpu.memory_space<smem>>) -> (i32, i32) {
    %c0_i32 = arith.constant 0 : i32
    %c0_i32_0 = arith.constant 0 : i32
    %c0_i32_1 = arith.constant 0 : i32
    return %c0_i32, %c0_i32_0 : i32, i32
  }
  func.func @transform_3(%arg0: i32, %arg1: memref<4xi32, #tpu.memory_space<smem>>, %arg2: memref<4xi32, #tpu.memory_space<smem>>, %arg3: memref<4xi32, #tpu.memory_space<smem>>, %arg4: memref<4xi32, #tpu.memory_space<smem>>) -> (i32, i32) {
    %0 = arith.index_cast %arg0 : i32 to index
    %1 = memref.load %arg1[%0] : memref<4xi32, #tpu.memory_space<smem>>
    %c0_i32 = arith.constant 0 : i32
    %c0_i32_0 = arith.constant 0 : i32
    return %1, %c0_i32 : i32, i32
  }
}

</mosaic_0001>

<bundles_post_ra>
// kernel: forward.3
= control target key start
LH: loop header
LB: loop body
LE: loop exit
PB: predicated region body
PF: predicated region fallthrough
CT: control target
= control target key end

     0   :  { %s1598_s0 = inlined_call_operand.vmem [shape: s32[4], index: 0, kind: input, shape index: {}]   ;;  %s1599_s4 = inlined_call_operand.vmem [shape: bf16[2,2,256,256], index: 4, kind: input, shape index: {}]   ;;  %s1600_s5 = inlined_call_operand.vmem [shape: bf16[512,128], index: 5, kind: input, shape index: {}]   ;;  %s1601_s6 = inlined_call_operand.vmem [shape: f32[1,128], index: 6, kind: input, shape index: {}]   ;;  %s1602_s7 = inlined_call_operand.vmem [shape: f32[512,128], index: 7, kind: output, shape index: {}]   ;;  %s1603_s1 = inlined_call_operand.vmem [shape: s32[4], index: 1, kind: input, shape index: {}]   ;;  %s1604_s2 = inlined_call_operand.vmem [shape: s32[4], index: 2, kind: input, shape index: {}]   ;;  %s1605_s3 = inlined_call_operand.vmem [shape: s32[4], index: 3, kind: input, shape index: {}]  }
   0x1   :  { %s12_s26 = sshll.u32 %s1598_s0, 4  ;;  %s16_s29 = sshll.u32 %s1603_s1, 4  ;;  %s13_s26 = int_to_ptr.vmem [resolvable:$true] %s12_s26  ;;  %s17_s29 = int_to_ptr.vmem [resolvable:$true] %s16_s29 }
   0x2   :  { %s1329_s30 = scalar_lea.vmem %s13_s26, 16  ;;  %p1334_p1 = scmp.lt.s32.totalorder %s13_s26, %s13_s26 }
   0x3   :  { %p1330_p0 = scmp.ne.s32.totalorder %s13_s26, %s1329_s30  ;;  %p1335_p2 = scmp.lt.s32.totalorder %s1329_s30, %s1329_s30 }
   0x5   :  { %p1336_p3 = por %p1335_p2, %p1334_p1 }
   0x7   :  { %p1337_p4 = pnand %p1336_p3, %p1330_p0 }
   0x9   :  { %1340 = shalt.err (!%p1337_p4)  }
   0xa   :  { %s1387_s8 = smov [#allocation4]   ;;  %s1341_s9 = scalar_lea.vmem %s17_s29, 16 }
   0xb   :  { %15 = dma.vmem_to_smem %s13_s26, 16, %s1387_s8, [#allocation3] }
   0xc   :  { %p1342_p5 = scmp.ne.s32.totalorder %s17_s29, %s1341_s9  ;;  %p1346_p6 = scmp.lt.s32.totalorder %s17_s29, %s17_s29 }
   0xd   :  { %p1347_p7 = scmp.lt.s32.totalorder %s1341_s9, %s1341_s9 }
   0xf   :  { %p1348_p8 = por %p1347_p7, %p1346_p6 }
  0x11   :  { %p1349_p9 = pnand %p1348_p8, %p1342_p5 }
  0x13   :  { %1352 = shalt.err (!%p1349_p9)  }
  0x14   :  { %s1388_s0 = smov [#allocation5]   ;;  %s20_s11 = sshll.u32 %s1604_s2, 4  ;;  %s21_s11 = int_to_ptr.vmem [resolvable:$true] %s20_s11 }
  0x15   :  { %19 = dma.vmem_to_smem %s17_s29, 16, %s1388_s0, [#allocation3] }
  0x16   :  { %s24_s14 = sshll.u32 %s1605_s3, 4  ;;  %s1353_s15 = scalar_lea.vmem %s21_s11, 16  ;;  %s25_s14 = int_to_ptr.vmem [resolvable:$true] %s24_s14 }
  0x17   :  { %p1354_p10 = scmp.ne.s32.totalorder %s21_s11, %s1353_s15  ;;  %p1358_p11 = scmp.lt.s32.totalorder %s21_s11, %s21_s11 }
  0x18   :  { %p1359_p12 = scmp.lt.s32.totalorder %s1353_s15, %s1353_s15 }
  0x1a   :  { %p1360_p13 = por %p1359_p12, %p1358_p11 }
  0x1c   :  { %p1361_p0 = pnand %p1360_p13, %p1354_p10 }
  0x1e   :  { %1364 = shalt.err (!%p1361_p0)  }
  0x1f   :  { %s1389_s16 = smov [#allocation6]   ;;  %s1365_s17 = scalar_lea.vmem %s25_s14, 16 }
  0x20   :  { %23 = dma.vmem_to_smem %s21_s11, 16, %s1389_s16, [#allocation3] }
  0x21   :  { %p1366_p1 = scmp.ne.s32.totalorder %s25_s14, %s1365_s17  ;;  %p1370_p2 = scmp.lt.s32.totalorder %s25_s14, %s25_s14 }
  0x22   :  { %p1371_p3 = scmp.lt.s32.totalorder %s1365_s17, %s1365_s17 }
  0x24   :  { %p1372_p4 = por %p1371_p3, %p1370_p2 }
  0x26   :  { %p1373_p5 = pnand %p1372_p4, %p1366_p1 }
  0x28   :  { %1376 = shalt.err (!%p1373_p5)  }
  0x29   :  { %s1390_s2 = smov [#allocation7]  }
  0x2a   :  { %27 = dma.vmem_to_smem %s25_s14, 16, %s1390_s2, [#allocation3] }
  0x2b   :  { %1381 = dma.done.wait [#allocation3], 64 }
  0x2c   :  { %1382 = vsyncadd [#allocation3], 4294967232 }
  0x2d   :  { %29 = sfence }
  0x2e   :  { %s1444_s3 = smov 0  }
  0x2f LB: > { %s1450_s18 = sadd.s32 4294967295, %s1385_s3   ;;  %p1063_p6 = scmp.ge.s32.totalorder %s1385_s3, 1  ;;  %s1385_s3 = sphi %s1444_s3, %s35_s3  }
  0x30   : > { %p190_p7 = scmp.lt.s32.totalorder %s1385_s3, 5 }
  0x32   : > { %p191_p8 = pnand %p1063_p6, %p190_p7 }
  0x33   : > { %s227_s19 = sld [smem:[#allocation4 + %s1450_s18]] (!%p191_p8) }
  0x34   : > { %194 = sbr.rel (%p191_p8) target bundleno = 405 (0x195), region = 32  ;;  %s228_s20 = sld [smem:[#allocation5 + %s1450_s18]] (!%p191_p8) }
  0x35   : > { %s240_s21 = sld [smem:[#allocation5 + %s1450_s18]] (!%p191_p8) }
  0x36   : > { %s248_s22 = sld [smem:[#allocation4 + %s1450_s18]] (!%p191_p8) }
  0x37   : > { %s257_s23 = sld [smem:[#allocation6 + %s1450_s18]] (!%p191_p8) }
  0x39   : > { %p229_p9 = scmp.lt.s32.totalorder (!%p191_p8), %s227_s19, 1 }
  0x3a   : > { %p231_p10 = scmp.lt.s32.totalorder (!%p191_p8), %s228_s20, 1 }
  0x3b   : > { %s1067_s24 = sshll.u32 %s240_s21, 5  ;;  %s1607_s19 = smov (!%p229_p9, %s227_s19), 1 }
  0x3c   : > { %s1069_s25 = sshll.u32 %s248_s22, 5  ;;  %s1609_s20 = smov (!%p231_p10, %s228_s20), 1 }
  0x3d   : > { %s1065_s26 = sshll.u32 %s1607_s19, 7  ;;  %s1064_s27 = sshll.u32 %s1609_s20, 6 }
  0x3e   : > { %p242_p11 = scmp.lt.s32.totalorder %s1067_s24, 63  ;;  %s235_s28 = sadd.s32 %s1065_s26, %s1064_s27 }
  0x3f   : > { %p250_p12 = scmp.lt.s32.totalorder %s1069_s25, 63  ;;  %s1066_s29 = sshll.u32 %s235_s28, 2 }
  0x40   : > { %s1462_s9 = scalar_lea.vmem %s1599_s4, %s1066_s29  ;;  %s1611_s24 = smov (!%p242_p11, %s1067_s24), 63 }
  0x41   : > { %s1613_s25 = smov (!%p250_p12, %s1069_s25), 63  ;;  %s1068_s0 = sshll.u32 %s1611_s24, 2 }
  0x42   : > { %s1467_s11 = scalar_lea.vmem %s1600_s5, %s1068_s0  ;;  %s1070_s12 = sshll.u32 %s1613_s25, 3 }
  0x43   : > { %s1472_s15 = scalar_lea.vmem %s1602_s7, %s1070_s12  ;;  %p1071_p13 = scmp.ne.s32.totalorder %s257_s23, 1 }
  0x44   : > { %v1391_v0 = vmov (!%p1071_p13), 0.0  }
  0x45   : > { %261 = sbr.rel (%p1071_p13) target bundleno = 85 (0x55), region = 36  ;;  %262 = vst [vmem:[#allocation2] sm:$0xff] (!%p1071_p13), %v1391_v0  ;;  %263 = vst [vmem:[#allocation2 + $0x8] sm:$0xff] (!%p1071_p13), %v1391_v0 }
  0x46   : > { %264 = vst [vmem:[#allocation2 + $0x10] sm:$0xff] (!%p1071_p13), %v1391_v0  ;;  %265 = vst [vmem:[#allocation2 + $0x18] sm:$0xff] (!%p1071_p13), %v1391_v0 }
  0x47   : > { %266 = vst [vmem:[#allocation2 + $0x20] sm:$0xff] (!%p1071_p13), %v1391_v0  ;;  %267 = vst [vmem:[#allocation2 + $0x28] sm:$0xff] (!%p1071_p13), %v1391_v0 }
  0x48   : > { %268 = vst [vmem:[#allocation2 + $0x30] sm:$0xff] (!%p1071_p13), %v1391_v0  ;;  %269 = vst [vmem:[#allocation2 + $0x38] sm:$0xff] (!%p1071_p13), %v1391_v0 }
  0x49   : > { %270 = vst [vmem:[#allocation2 + $0x40] sm:$0xff] (!%p1071_p13), %v1391_v0  ;;  %271 = vst [vmem:[#allocation2 + $0x48] sm:$0xff] (!%p1071_p13), %v1391_v0 }
  0x4a   : > { %272 = vst [vmem:[#allocation2 + $0x50] sm:$0xff] (!%p1071_p13), %v1391_v0  ;;  %273 = vst [vmem:[#allocation2 + $0x58] sm:$0xff] (!%p1071_p13), %v1391_v0 }
  0x4b   : > { %274 = vst [vmem:[#allocation2 + $0x60] sm:$0xff] (!%p1071_p13), %v1391_v0  ;;  %275 = vst [vmem:[#allocation2 + $0x68] sm:$0xff] (!%p1071_p13), %v1391_v0 }
  0x4c   : > { %276 = vst [vmem:[#allocation2 + $0x70] sm:$0xff] %v1391_v0  ;;  %277 = vst [vmem:[#allocation2 + $0x78] sm:$0xff] %v1391_v0 }
  0x4d   : > { %278 = vst [vmem:[#allocation2 + $0x80] sm:$0xff] %v1391_v0  ;;  %279 = vst [vmem:[#allocation2 + $0x88] sm:$0xff] %v1391_v0 }
  0x4e   : > { %280 = vst [vmem:[#allocation2 + $0x90] sm:$0xff] %v1391_v0  ;;  %281 = vst [vmem:[#allocation2 + $0x98] sm:$0xff] %v1391_v0 }
  0x4f   : > { %282 = vst [vmem:[#allocation2 + $0xa0] sm:$0xff] %v1391_v0  ;;  %283 = vst [vmem:[#allocation2 + $0xa8] sm:$0xff] %v1391_v0 }
  0x50   : > { %284 = vst [vmem:[#allocation2 + $0xb0] sm:$0xff] %v1391_v0  ;;  %285 = vst [vmem:[#allocation2 + $0xb8] sm:$0xff] %v1391_v0 }
  0x51   : > { %286 = vst [vmem:[#allocation2 + $0xc0] sm:$0xff] %v1391_v0  ;;  %287 = vst [vmem:[#allocation2 + $0xc8] sm:$0xff] %v1391_v0 }
  0x52   : > { %288 = vst [vmem:[#allocation2 + $0xd0] sm:$0xff] %v1391_v0  ;;  %289 = vst [vmem:[#allocation2 + $0xd8] sm:$0xff] %v1391_v0 }
  0x53   : > { %290 = vst [vmem:[#allocation2 + $0xe0] sm:$0xff] %v1391_v0  ;;  %291 = vst [vmem:[#allocation2 + $0xe8] sm:$0xff] %v1391_v0 }
  0x54   : > { %292 = vst [vmem:[#allocation2 + $0xf0] sm:$0xff] %v1391_v0  ;;  %293 = vst [vmem:[#allocation2 + $0xf8] sm:$0xff] %v1391_v0 }
  0x55 PF: > { %v1265_v1 = vld [vmem:[%s1467_s11 + $0x40] sm:$0xff]   ;;  %v1267_v3 = vld [vmem:[%s1467_s11 + $0x48] sm:$0xff]   ;;  %v1269_v5 = vld [vmem:[%s1467_s11 + $0x50] sm:$0xff]   ;;  %s1523_s16 = sld [smem:[#allocation7 + %s1450_s18]] }
  0x56   : > { %v1266_v2 = vld [vmem:[%s1467_s11] sm:$0xff]   ;;  %1124 = vmatprep.subr.bf16.mxu0 %v1265_v1  ;;  %1236 = vmatprep.subr.bf16.mxu1 %v1265_v1  ;;  %v1268_v4 = vld [vmem:[%s1467_s11 + $0x8] sm:$0xff]   ;;  %v1270_v6 = vld [vmem:[%s1467_s11 + $0x10] sm:$0xff]  }
  0x57   : > { %1125 = vmatpush3.bf16.msra.mxu0 %v1266_v2  ;;  %1244 = vmatpush3.bf16.msra.mxu1 %v1266_v2  ;;  %v1271_v7 = vld [vmem:[%s1467_s11 + $0x58] sm:$0xff]   ;;  %v1273_v9 = vld [vmem:[%s1467_s11 + $0x60] sm:$0xff]   ;;  %v1275_v11 = vld [vmem:[%s1467_s11 + $0x68] sm:$0xff]  }
  0x58   : > { %1126 = vmatprep.subr.bf16.mxu0 %v1267_v3  ;;  %1237 = vmatprep.subr.bf16.mxu1 %v1267_v3  ;;  %v1272_v8 = vld [vmem:[%s1467_s11 + $0x18] sm:$0xff]   ;;  %v1274_v10 = vld [vmem:[%s1467_s11 + $0x20] sm:$0xff]   ;;  %v1276_v14 = vld [vmem:[%s1467_s11 + $0x28] sm:$0xff]  }
  0x59   : > { %v1283_v12 = vld [vmem:[%s1462_s9 + $0x4] ss:$8 sps:$4 sm:$0xff]   ;;  %v1277_v15 = vld [vmem:[%s1467_s11 + $0x70] sm:$0xff]   ;;  %v1279_v17 = vld [vmem:[%s1467_s11 + $0x78] sm:$0xff]  }
  0x5a   : > { %v1286_v13 = vld [vmem:[%s1462_s9 + $0x84] ss:$8 sps:$4 sm:$0xff]   ;;  %678 = vmatprep.mubr.bf16.mxu0 %v1283_v12  ;;  %v1278_v16 = vld [vmem:[%s1467_s11 + $0x30] sm:$0xff]   ;;  %v1280_v18 = vld [vmem:[%s1467_s11 + $0x38] sm:$0xff]  }
  0x5b   : > { %1127 = vmatpush3.bf16.msra.mxu0 %v1268_v4  ;;  %1245 = vmatpush3.bf16.msra.mxu1 %v1268_v4  ;;  %v1281_v19 = vld [vmem:[%s1462_s9] ss:$8 sps:$4 sm:$0xff]   ;;  %v1287_v21 = vld [vmem:[%s1462_s9 + $0x14] ss:$8 sps:$4 sm:$0xff]   ;;  %v1291_v23 = vld [vmem:[%s1462_s9 + $0x10] ss:$8 sps:$4 sm:$0xff]  }
  0x5c   : > { %1128 = vmatprep.subr.bf16.mxu0 %v1269_v5  ;;  %1238 = vmatprep.subr.bf16.mxu1 %v1269_v5  ;;  %v1284_v20 = vld [vmem:[%s1462_s9 + $0x80] ss:$8 sps:$4 sm:$0xff]   ;;  %v1289_v22 = vld [vmem:[%s1462_s9 + $0x94] ss:$8 sps:$4 sm:$0xff]   ;;  %v1292_v24 = vld [vmem:[%s1462_s9 + $0x90] ss:$8 sps:$4 sm:$0xff]  }
  0x5d   : > { %742 = vmatprep.mubr.bf16.mxu1 %v1286_v13  ;;  %v1293_v25 = vld [vmem:[%s1462_s9 + $0x24] ss:$8 sps:$4 sm:$0xff]   ;;  %v1297_v27 = vld [vmem:[%s1462_s9 + $0x20] ss:$8 sps:$4 sm:$0xff]   ;;  %v1299_v29 = vld [vmem:[%s1462_s9 + $0x34] ss:$8 sps:$4 sm:$0xff]  }
  0x5e   : > { %v1295_v26 = vld [vmem:[%s1462_s9 + $0xa4] ss:$8 sps:$4 sm:$0xff]   ;;  %v1298_v28 = vld [vmem:[%s1462_s9 + $0xa0] ss:$8 sps:$4 sm:$0xff]   ;;  %v1301_v30 = vld [vmem:[%s1462_s9 + $0xb4] ss:$8 sps:$4 sm:$0xff]  }
  0x5f   : > { %1129 = vmatpush3.bf16.msra.mxu0 %v1270_v6  ;;  %1246 = vmatpush3.bf16.msra.mxu1 %v1270_v6  ;;  %v1303_v31 = vld [vmem:[%s1462_s9 + $0x30] ss:$8 sps:$4 sm:$0xff]   ;;  %v1305_v33 = vld [vmem:[%s1462_s9 + $0x44] ss:$8 sps:$4 sm:$0xff]   ;;  %v1309_v35 = vld [vmem:[%s1462_s9 + $0x40] ss:$8 sps:$4 sm:$0xff]  }
  0x60   : > { %1130 = vmatprep.subr.bf16.mxu0 %v1271_v7  ;;  %1239 = vmatprep.subr.bf16.mxu1 %v1271_v7  ;;  %v1304_v32 = vld [vmem:[%s1462_s9 + $0xb0] ss:$8 sps:$4 sm:$0xff]   ;;  %v1307_v34 = vld [vmem:[%s1462_s9 + $0xc4] ss:$8 sps:$4 sm:$0xff]   ;;  %v1310_v36 = vld [vmem:[%s1462_s9 + $0xc0] ss:$8 sps:$4 sm:$0xff]  }
  0x61   : > { %v1311_v37 = vld [vmem:[%s1462_s9 + $0x54] ss:$8 sps:$4 sm:$0xff]   ;;  %v1315_v39 = vld [vmem:[%s1462_s9 + $0x50] ss:$8 sps:$4 sm:$0xff]   ;;  %v1317_v41 = vld [vmem:[%s1462_s9 + $0x64] ss:$8 sps:$4 sm:$0xff]  }
  0x62   : > { %v1313_v38 = vld [vmem:[%s1462_s9 + $0xd4] ss:$8 sps:$4 sm:$0xff]   ;;  %v1316_v40 = vld [vmem:[%s1462_s9 + $0xd0] ss:$8 sps:$4 sm:$0xff]   ;;  %v1319_v42 = vld [vmem:[%s1462_s9 + $0xe4] ss:$8 sps:$4 sm:$0xff]  }
  0x63   : > { %1131 = vmatpush3.bf16.msra.mxu0 %v1272_v8  ;;  %1247 = vmatpush3.bf16.msra.mxu1 %v1272_v8  ;;  %v1321_v43 = vld [vmem:[%s1462_s9 + $0x60] ss:$8 sps:$4 sm:$0xff]   ;;  %v1323_v45 = vld [vmem:[%s1462_s9 + $0x74] ss:$8 sps:$4 sm:$0xff]   ;;  %v1327_v47 = vld [vmem:[%s1462_s9 + $0x70] ss:$8 sps:$4 sm:$0xff]  }
  0x64   : > { %1132 = vmatprep.subr.bf16.mxu0 %v1273_v9  ;;  %1240 = vmatprep.subr.bf16.mxu1 %v1273_v9  ;;  %v1322_v44 = vld [vmem:[%s1462_s9 + $0xe0] ss:$8 sps:$4 sm:$0xff]   ;;  %v1325_v46 = vld [vmem:[%s1462_s9 + $0xf4] ss:$8 sps:$4 sm:$0xff]   ;;  %v1328_v48 = vld [vmem:[%s1462_s9 + $0xf0] ss:$8 sps:$4 sm:$0xff]  }
  0x65   : > { %v294_v51 = vld [vmem:[#allocation2] sm:$0xff]  ;;  %v295_v59 = vld [vmem:[#allocation2 + $0x8] sm:$0xff]  ;;  %v296_v7 = vld [vmem:[#allocation2 + $0x10] sm:$0xff]  ;;  %p1120_p0 = scmp.ne.s32.totalorder %s1523_s16, 1 }
  0x66   : > { %v310_v53 = vld [vmem:[#allocation2 + $0x80] sm:$0xff]  ;;  %v311_v61 = vld [vmem:[#allocation2 + $0x88] sm:$0xff]  ;;  %v312_v9 = vld [vmem:[#allocation2 + $0x90] sm:$0xff] }
  0x67   : > { %1133 = vmatpush3.bf16.msra.mxu0 %v1274_v10  ;;  %1248 = vmatpush3.bf16.msra.mxu1 %v1274_v10 }
  0x68   : > { %1134 = vmatprep.subr.bf16.mxu0 %v1275_v11  ;;  %1241 = vmatprep.subr.bf16.mxu1 %v1275_v11 }
  0x6b   : > { %1135 = vmatpush3.bf16.msra.mxu0 %v1276_v14  ;;  %1249 = vmatpush3.bf16.msra.mxu1 %v1276_v14 }
  0x6c   : > { %1136 = vmatprep.subr.bf16.mxu0 %v1277_v15  ;;  %1242 = vmatprep.subr.bf16.mxu1 %v1277_v15  ;;  %v297_v15 = vld [vmem:[#allocation2 + $0x18] sm:$0xff] }
  0x6f   : > { %1137 = vmatpush3.bf16.msra.mxu0 %v1278_v16  ;;  %1250 = vmatpush3.bf16.msra.mxu1 %v1278_v16 }
  0x70   : > { %1138 = vmatprep.subr.bf16.mxu0 %v1279_v17  ;;  %1243 = vmatprep.subr.bf16.mxu1 %v1279_v17  ;;  %v313_v17 = vld [vmem:[#allocation2 + $0x98] sm:$0xff] }
  0x73   : > { %1139 = vmatpush3.bf16.msra.mxu0 %v1280_v18  ;;  %1251 = vmatpush3.bf16.msra.mxu1 %v1280_v18 }
  0x76   : > { %679 = vmatmul.mubr.bf16.vlgmr.msra.gmra.mrb[0].mxu0 %v1281_v19  ;;  %743 = vmatmul.mubr.bf16.vlgmr.msra.gmra.mrb[0].mxu1 %v1284_v20 }
  0x77   : > { %686 = vmatprep.mubr.bf16.mxu0 %v1287_v21  ;;  %750 = vmatprep.mubr.bf16.mxu1 %v1289_v22 }
  0x7e   : > { %687 = vmatmul.mubr.bf16.gmra.mrb[4].mxu0 %v1291_v23  ;;  %751 = vmatmul.mubr.bf16.gmra.mrb[4].mxu1 %v1292_v24 }
  0x7f   : > { %694 = vmatprep.mubr.bf16.mxu0 %v1293_v25  ;;  %758 = vmatprep.mubr.bf16.mxu1 %v1295_v26 }
  0x86   : > { %695 = vmatmul.mubr.bf16.gmra.mrb[8].mxu0 %v1297_v27  ;;  %759 = vmatmul.mubr.bf16.gmra.mrb[8].mxu1 %v1298_v28  ;;  %v298_v27 = vld [vmem:[#allocation2 + $0x20] sm:$0xff] }
  0x87   : > { %702 = vmatprep.mubr.bf16.mxu0 %v1299_v29  ;;  %766 = vmatprep.mubr.bf16.mxu1 %v1301_v30  ;;  %v314_v29 = vld [vmem:[#allocation2 + $0xa0] sm:$0xff] }
  0x8e   : > { %703 = vmatmul.mubr.bf16.gmra.mrb[12].mxu0 %v1303_v31  ;;  %767 = vmatmul.mubr.bf16.gmra.mrb[12].mxu1 %v1304_v32 }
  0x8f   : > { %710 = vmatprep.mubr.bf16.mxu0 %v1305_v33  ;;  %774 = vmatprep.mubr.bf16.mxu1 %v1307_v34 }
  0x96   : > { %711 = vmatmul.mubr.bf16.gmra.mrb[16].mxu0 %v1309_v35  ;;  %775 = vmatmul.mubr.bf16.gmra.mrb[16].mxu1 %v1310_v36  ;;  %v299_v35 = vld [vmem:[#allocation2 + $0x28] sm:$0xff] }
  0x97   : > { %718 = vmatprep.mubr.bf16.mxu0 %v1311_v37  ;;  %782 = vmatprep.mubr.bf16.mxu1 %v1313_v38  ;;  %v315_v37 = vld [vmem:[#allocation2 + $0xa8] sm:$0xff] }
  0x9e   : > { %719 = vmatmul.mubr.bf16.gmra.mrb[20].mxu0 %v1315_v39  ;;  %783 = vmatmul.mubr.bf16.gmra.mrb[20].mxu1 %v1316_v40 }
  0x9f   : > { %726 = vmatprep.mubr.bf16.mxu0 %v1317_v41  ;;  %790 = vmatprep.mubr.bf16.mxu1 %v1319_v42 }
  0xa6   : > { %727 = vmatmul.mubr.bf16.gmra.mrb[24].mxu0 %v1321_v43  ;;  %791 = vmatmul.mubr.bf16.gmra.mrb[24].mxu1 %v1322_v44 }
  0xa7   : > { %734 = vmatprep.mubr.bf16.mxu0 %v1323_v45  ;;  %798 = vmatprep.mubr.bf16.mxu1 %v1325_v46 }
  0xae   : > { %735 = vmatmul.mubr.bf16.gmra.mrb[28].mxu0 %v1327_v47  ;;  %799 = vmatmul.mubr.bf16.gmra.mrb[28].mxu1 %v1328_v48  ;;  %v300_v47 = vld [vmem:[#allocation2 + $0x30] sm:$0xff] }
 0x149   : > { %v1140_v49 = vpop.f32.mrb[0].mxu0  ;;  %v1188_v50 = vpop.f32.mrb[0].mxu1 }
 0x14a   : > { %v1141_v52 = vpop.f32.mrb[1].mxu0  ;;  %v1189_v54 = vpop.f32.mrb[1].mxu1 }
 0x14b   : > { %v1142_v55 = vadd.f32 %v1141_v52, %v1140_v49  ;;  %v1190_v56 = vadd.f32 %v1189_v54, %v1188_v50  ;;  %v1143_v57 = vpop.f32.mrb[2].mxu0  ;;  %v1191_v58 = vpop.f32.mrb[2].mxu1  ;;  %v316_v49 = vld [vmem:[#allocation2 + $0xb0] sm:$0xff] }
 0x14c   : > { %v1144_v60 = vpop.f32.mrb[3].mxu0  ;;  %v1192_v62 = vpop.f32.mrb[3].mxu1 }
 0x14d   : > { %v807_v63 = vadd.f32 %v1142_v55, %v294_v51  ;;  %v823_v0 = vadd.f32 %v1190_v56, %v310_v53  ;;  %v1145_v1 = vadd.f32 %v1144_v60, %v1143_v57  ;;  %v1193_v2 = vadd.f32 %v1192_v62, %v1191_v58  ;;  %v301_v55 = vld [vmem:[#allocation2 + $0x38] sm:$0xff] }
 0x14e   : > { %v317_v57 = vld [vmem:[#allocation2 + $0xb8] sm:$0xff] }
 0x14f   : > { %839 = vst [vmem:[#allocation2] sm:$0xff] %v807_v63  ;;  %855 = vst [vmem:[#allocation2 + $0x80] sm:$0xff] %v823_v0  ;;  %v808_v3 = vadd.f32 %v1145_v1, %v295_v59  ;;  %v824_v4 = vadd.f32 %v1193_v2, %v311_v61 }
 0x151   : > { %840 = vst [vmem:[#allocation2 + $0x8] sm:$0xff] %v808_v3  ;;  %856 = vst [vmem:[#allocation2 + $0x88] sm:$0xff] %v824_v4  ;;  %v1146_v5 = vpop.f32.mrb[4].mxu0  ;;  %v1194_v6 = vpop.f32.mrb[4].mxu1  ;;  %v302_v3 = vld [vmem:[#allocation2 + $0x40] sm:$0xff] }
 0x152   : > { %v1147_v8 = vpop.f32.mrb[5].mxu0  ;;  %v1195_v10 = vpop.f32.mrb[5].mxu1 }
 0x153   : > { %v1148_v11 = vadd.f32 %v1147_v8, %v1146_v5  ;;  %v1196_v12 = vadd.f32 %v1195_v10, %v1194_v6  ;;  %v1149_v13 = vpop.f32.mrb[6].mxu0  ;;  %v1197_v14 = vpop.f32.mrb[6].mxu1  ;;  %v318_v5 = vld [vmem:[#allocation2 + $0xc0] sm:$0xff] }
 0x154   : > { %v1150_v16 = vpop.f32.mrb[7].mxu0  ;;  %v1198_v18 = vpop.f32.mrb[7].mxu1 }
 0x155   : > { %v809_v19 = vadd.f32 %v1148_v11, %v296_v7  ;;  %v825_v20 = vadd.f32 %v1196_v12, %v312_v9  ;;  %v1151_v21 = vadd.f32 %v1150_v16, %v1149_v13  ;;  %v1199_v22 = vadd.f32 %v1198_v18, %v1197_v14  ;;  %v303_v11 = vld [vmem:[#allocation2 + $0x48] sm:$0xff] }
 0x156   : > { %v319_v13 = vld [vmem:[#allocation2 + $0xc8] sm:$0xff] }
 0x157   : > { %841 = vst [vmem:[#allocation2 + $0x10] sm:$0xff] %v809_v19  ;;  %857 = vst [vmem:[#allocation2 + $0x90] sm:$0xff] %v825_v20  ;;  %v810_v23 = vadd.f32 %v1151_v21, %v297_v15  ;;  %v826_v24 = vadd.f32 %v1199_v22, %v313_v17 }
 0x159   : > { %842 = vst [vmem:[#allocation2 + $0x18] sm:$0xff] %v810_v23  ;;  %858 = vst [vmem:[#allocation2 + $0x98] sm:$0xff] %v826_v24  ;;  %v1152_v25 = vpop.f32.mrb[8].mxu0  ;;  %v1200_v26 = vpop.f32.mrb[8].mxu1  ;;  %v304_v23 = vld [vmem:[#allocation2 + $0x50] sm:$0xff] }
 0x15a   : > { %v1153_v28 = vpop.f32.mrb[9].mxu0  ;;  %v1201_v30 = vpop.f32.mrb[9].mxu1 }
 0x15b   : > { %v1154_v31 = vadd.f32 %v1153_v28, %v1152_v25  ;;  %v1202_v32 = vadd.f32 %v1201_v30, %v1200_v26  ;;  %v1155_v33 = vpop.f32.mrb[10].mxu0  ;;  %v1203_v34 = vpop.f32.mrb[10].mxu1  ;;  %v320_v25 = vld [vmem:[#allocation2 + $0xd0] sm:$0xff] }
 0x15c   : > { %v1156_v36 = vpop.f32.mrb[11].mxu0  ;;  %v1204_v38 = vpop.f32.mrb[11].mxu1 }
 0x15d   : > { %v811_v39 = vadd.f32 %v1154_v31, %v298_v27  ;;  %v827_v40 = vadd.f32 %v1202_v32, %v314_v29  ;;  %v1157_v41 = vadd.f32 %v1156_v36, %v1155_v33  ;;  %v1205_v42 = vadd.f32 %v1204_v38, %v1203_v34  ;;  %v305_v31 = vld [vmem:[#allocation2 + $0x58] sm:$0xff] }
 0x15e   : > { %v321_v33 = vld [vmem:[#allocation2 + $0xd8] sm:$0xff] }
 0x15f   : > { %843 = vst [vmem:[#allocation2 + $0x20] sm:$0xff] %v811_v39  ;;  %859 = vst [vmem:[#allocation2 + $0xa0] sm:$0xff] %v827_v40  ;;  %v812_v43 = vadd.f32 %v1157_v41, %v299_v35  ;;  %v828_v44 = vadd.f32 %v1205_v42, %v315_v37 }
 0x161   : > { %844 = vst [vmem:[#allocation2 + $0x28] sm:$0xff] %v812_v43  ;;  %860 = vst [vmem:[#allocation2 + $0xa8] sm:$0xff] %v828_v44  ;;  %v1158_v45 = vpop.f32.mrb[12].mxu0  ;;  %v1206_v46 = vpop.f32.mrb[12].mxu1  ;;  %v306_v43 = vld [vmem:[#allocation2 + $0x60] sm:$0xff] }
 0x162   : > { %v1159_v48 = vpop.f32.mrb[13].mxu0  ;;  %v1207_v50 = vpop.f32.mrb[13].mxu1 }
 0x163   : > { %v1160_v51 = vadd.f32 %v1159_v48, %v1158_v45  ;;  %v1208_v52 = vadd.f32 %v1207_v50, %v1206_v46  ;;  %v1161_v53 = vpop.f32.mrb[14].mxu0  ;;  %v1209_v54 = vpop.f32.mrb[14].mxu1  ;;  %v322_v45 = vld [vmem:[#allocation2 + $0xe0] sm:$0xff] }
 0x164   : > { %v1162_v56 = vpop.f32.mrb[15].mxu0  ;;  %v1210_v58 = vpop.f32.mrb[15].mxu1 }
 0x165   : > { %v813_v59 = vadd.f32 %v1160_v51, %v300_v47  ;;  %v829_v60 = vadd.f32 %v1208_v52, %v316_v49  ;;  %v1163_v61 = vadd.f32 %v1162_v56, %v1161_v53  ;;  %v1211_v62 = vadd.f32 %v1210_v58, %v1209_v54  ;;  %v307_v51 = vld [vmem:[#allocation2 + $0x68] sm:$0xff] }
 0x166   : > { %v323_v53 = vld [vmem:[#allocation2 + $0xe8] sm:$0xff] }
 0x167   : > { %845 = vst [vmem:[#allocation2 + $0x30] sm:$0xff] %v813_v59  ;;  %861 = vst [vmem:[#allocation2 + $0xb0] sm:$0xff] %v829_v60  ;;  %v814_v63 = vadd.f32 %v1163_v61, %v301_v55  ;;  %v830_v0 = vadd.f32 %v1211_v62, %v317_v57 }
 0x169   : > { %846 = vst [vmem:[#allocation2 + $0x38] sm:$0xff] %v814_v63  ;;  %862 = vst [vmem:[#allocation2 + $0xb8] sm:$0xff] %v830_v0  ;;  %v1164_v1 = vpop.f32.mrb[16].mxu0  ;;  %v1212_v2 = vpop.f32.mrb[16].mxu1  ;;  %v308_v63 = vld [vmem:[#allocation2 + $0x70] sm:$0xff] }
 0x16a   : > { %v1165_v4 = vpop.f32.mrb[17].mxu0  ;;  %v1213_v6 = vpop.f32.mrb[17].mxu1 }
 0x16b   : > { %v1166_v7 = vadd.f32 %v1165_v4, %v1164_v1  ;;  %v1214_v8 = vadd.f32 %v1213_v6, %v1212_v2  ;;  %v1167_v9 = vpop.f32.mrb[18].mxu0  ;;  %v1215_v10 = vpop.f32.mrb[18].mxu1  ;;  %v324_v1 = vld [vmem:[#allocation2 + $0xf0] sm:$0xff] }
 0x16c   : > { %v1168_v12 = vpop.f32.mrb[19].mxu0  ;;  %v1216_v14 = vpop.f32.mrb[19].mxu1 }
 0x16d   : > { %v815_v15 = vadd.f32 %v1166_v7, %v302_v3  ;;  %v831_v16 = vadd.f32 %v1214_v8, %v318_v5  ;;  %v1169_v17 = vadd.f32 %v1168_v12, %v1167_v9  ;;  %v1217_v18 = vadd.f32 %v1216_v14, %v1215_v10  ;;  %v309_v7 = vld [vmem:[#allocation2 + $0x78] sm:$0xff] }
 0x16e   : > { %v325_v9 = vld [vmem:[#allocation2 + $0xf8] sm:$0xff] }
 0x16f   : > { %847 = vst [vmem:[#allocation2 + $0x40] sm:$0xff] %v815_v15  ;;  %863 = vst [vmem:[#allocation2 + $0xc0] sm:$0xff] %v831_v16  ;;  %v816_v19 = vadd.f32 %v1169_v17, %v303_v11  ;;  %v832_v20 = vadd.f32 %v1217_v18, %v319_v13  ;;  %v876_v17 = vld [vmem:[#allocation2] sm:$0xff] (!%p1120_p0) }
 0x170   : > { %v1529_v18 = vld [vmem:[%s1601_s6] ss:$0 sm:$0xff] (!%p1120_p0) }
 0x171   : > { %848 = vst [vmem:[#allocation2 + $0x48] sm:$0xff] %v816_v19  ;;  %864 = vst [vmem:[#allocation2 + $0xc8] sm:$0xff] %v832_v20  ;;  %v1170_v21 = vpop.f32.mrb[20].mxu0  ;;  %v1218_v22 = vpop.f32.mrb[20].mxu1  ;;  %v877_v19 = vld [vmem:[#allocation2 + $0x8] sm:$0xff] (!%p1120_p0)  ;;  %v915_v20 = vadd.f32 (!%p1120_p0), %v1529_v18, %v876_v17 }
 0x172   : > { %v1171_v24 = vpop.f32.mrb[21].mxu0  ;;  %v1219_v26 = vpop.f32.mrb[21].mxu1 }
 0x173   : > { %v1172_v27 = vadd.f32 %v1171_v24, %v1170_v21  ;;  %v1220_v28 = vadd.f32 %v1219_v26, %v1218_v22  ;;  %v1173_v29 = vpop.f32.mrb[22].mxu0  ;;  %v1221_v30 = vpop.f32.mrb[22].mxu1  ;;  %v916_v21 = vadd.f32 (!%p1120_p0), %v1529_v18, %v877_v19  ;;  %v878_v22 = vld [vmem:[#allocation2 + $0x10] sm:$0xff] (!%p1120_p0)  ;;  %v880_v24 = vld [vmem:[#allocation2 + $0x20] sm:$0xff] (!%p1120_p0)  ;;  %947 = vst [vmem:[%s1472_s15] sm:$0xff] (!%p1120_p0), %v915_v20 }
 0x174   : > { %v1174_v32 = vpop.f32.mrb[23].mxu0  ;;  %v1222_v34 = vpop.f32.mrb[23].mxu1 }
 0x175   : > { %v817_v35 = vadd.f32 %v1172_v27, %v304_v23  ;;  %v833_v36 = vadd.f32 %v1220_v28, %v320_v25  ;;  %v1175_v37 = vadd.f32 %v1174_v32, %v1173_v29  ;;  %v1223_v38 = vadd.f32 %v1222_v34, %v1221_v30  ;;  %v879_v23 = vld [vmem:[#allocation2 + $0x18] sm:$0xff] (!%p1120_p0)  ;;  %v881_v28 = vld [vmem:[#allocation2 + $0x28] sm:$0xff] (!%p1120_p0)  ;;  %v882_v29 = vld [vmem:[#allocation2 + $0x30] sm:$0xff] (!%p1120_p0)  ;;  %948 = vst [vmem:[%s1472_s15 + $0x8] sm:$0xff] (!%p1120_p0), %v916_v21 }
 0x176   : > { %v917_v25 = vadd.f32 (!%p1120_p0), %v1529_v18, %v878_v22  ;;  %v918_v26 = vadd.f32 (!%p1120_p0), %v1529_v18, %v879_v23  ;;  %v919_v27 = vadd.f32 (!%p1120_p0), %v1529_v18, %v880_v24  ;;  %v883_v30 = vld [vmem:[#allocation2 + $0x38] sm:$0xff] (!%p1120_p0)  ;;  %v921_v32 = vadd.f32 (!%p1120_p0), %v1529_v18, %v882_v29  ;;  %v884_v34 = vld [vmem:[#allocation2 + $0x40] sm:$0xff] (!%p1120_p0) }
 0x177   : > { %849 = vst [vmem:[#allocation2 + $0x50] sm:$0xff] %v817_v35  ;;  %865 = vst [vmem:[#allocation2 + $0xd0] sm:$0xff] %v833_v36  ;;  %v818_v39 = vadd.f32 %v1175_v37, %v305_v31  ;;  %v834_v40 = vadd.f32 %v1223_v38, %v321_v33  ;;  %v920_v31 = vadd.f32 (!%p1120_p0), %v1529_v18, %v881_v28 }
 0x178   : > { %v922_v33 = vadd.f32 (!%p1120_p0), %v1529_v18, %v883_v30  ;;  %v885_v35 = vld [vmem:[#allocation2 + $0x48] sm:$0xff] (!%p1120_p0)  ;;  %949 = vst [vmem:[%s1472_s15 + $0x10] sm:$0xff] (!%p1120_p0), %v917_v25  ;;  %950 = vst [vmem:[%s1472_s15 + $0x18] sm:$0xff] (!%p1120_p0), %v918_v26  ;;  %v923_v37 = vadd.f32 (!%p1120_p0), %v1529_v18, %v884_v34 }
 0x179   : > { %850 = vst [vmem:[#allocation2 + $0x58] sm:$0xff] %v818_v39  ;;  %866 = vst [vmem:[#allocation2 + $0xd8] sm:$0xff] %v834_v40  ;;  %v1176_v41 = vpop.f32.mrb[24].mxu0  ;;  %v1224_v42 = vpop.f32.mrb[24].mxu1  ;;  %v924_v38 = vadd.f32 (!%p1120_p0), %v1529_v18, %v885_v35 }
 0x17a   : > { %v1177_v44 = vpop.f32.mrb[25].mxu0  ;;  %v1225_v46 = vpop.f32.mrb[25].mxu1  ;;  %951 = vst [vmem:[%s1472_s15 + $0x20] sm:$0xff] (!%p1120_p0), %v919_v27  ;;  %952 = vst [vmem:[%s1472_s15 + $0x28] sm:$0xff] (!%p1120_p0), %v920_v31 }
 0x17b   : > { %v1178_v47 = vadd.f32 %v1177_v44, %v1176_v41  ;;  %v1226_v48 = vadd.f32 %v1225_v46, %v1224_v42  ;;  %v1179_v49 = vpop.f32.mrb[26].mxu0  ;;  %v1227_v50 = vpop.f32.mrb[26].mxu1  ;;  %953 = vst [vmem:[%s1472_s15 + $0x30] sm:$0xff] (!%p1120_p0), %v921_v32  ;;  %954 = vst [vmem:[%s1472_s15 + $0x38] sm:$0xff] (!%p1120_p0), %v922_v33 }
 0x17c   : > { %v1180_v52 = vpop.f32.mrb[27].mxu0  ;;  %v1228_v54 = vpop.f32.mrb[27].mxu1  ;;  %955 = vst [vmem:[%s1472_s15 + $0x40] sm:$0xff] (!%p1120_p0), %v923_v37  ;;  %956 = vst [vmem:[%s1472_s15 + $0x48] sm:$0xff] (!%p1120_p0), %v924_v38 }
 0x17d   : > { %v819_v55 = vadd.f32 %v1178_v47, %v306_v43  ;;  %v835_v56 = vadd.f32 %v1226_v48, %v322_v45  ;;  %v1181_v57 = vadd.f32 %v1180_v52, %v1179_v49  ;;  %v1229_v58 = vadd.f32 %v1228_v54, %v1227_v50  ;;  %v892_v48 = vld [vmem:[#allocation2 + $0x80] sm:$0xff] (!%p1120_p0)  ;;  %v893_v52 = vld [vmem:[#allocation2 + $0x88] sm:$0xff] (!%p1120_p0)  ;;  %v895_v54 = vld [vmem:[#allocation2 + $0x98] sm:$0xff] (!%p1120_p0) }
 0x17e   : > { %v886_v36 = vld [vmem:[#allocation2 + $0x50] sm:$0xff] (!%p1120_p0) }
 0x17f   : > { %851 = vst [vmem:[#allocation2 + $0x60] sm:$0xff] %v819_v55  ;;  %867 = vst [vmem:[#allocation2 + $0xe0] sm:$0xff] %v835_v56  ;;  %v820_v59 = vadd.f32 %v1181_v57, %v307_v51  ;;  %v836_v60 = vadd.f32 %v1229_v58, %v323_v53  ;;  %v925_v39 = vadd.f32 (!%p1120_p0), %v1529_v18, %v886_v36  ;;  %v894_v53 = vld [vmem:[#allocation2 + $0x90] sm:$0xff] (!%p1120_p0)  ;;  %v896_v58 = vld [vmem:[#allocation2 + $0xa0] sm:$0xff] (!%p1120_p0) }
 0x180   : > { %v887_v40 = vld [vmem:[#allocation2 + $0x58] sm:$0xff] (!%p1120_p0)  ;;  %v931_v51 = vadd.f32 (!%p1120_p0), %v1529_v18, %v892_v48  ;;  %v932_v55 = vadd.f32 (!%p1120_p0), %v1529_v18, %v893_v52  ;;  %v933_v56 = vadd.f32 (!%p1120_p0), %v1529_v18, %v894_v53  ;;  %v934_v57 = vadd.f32 (!%p1120_p0), %v1529_v18, %v895_v54 }
 0x181   : > { %852 = vst [vmem:[#allocation2 + $0x68] sm:$0xff] %v820_v59  ;;  %868 = vst [vmem:[#allocation2 + $0xe8] sm:$0xff] %v836_v60  ;;  %v1182_v61 = vpop.f32.mrb[28].mxu0  ;;  %v1230_v62 = vpop.f32.mrb[28].mxu1  ;;  %v926_v43 = vadd.f32 (!%p1120_p0), %v1529_v18, %v887_v40  ;;  %v897_v59 = vld [vmem:[#allocation2 + $0xa8] sm:$0xff] (!%p1120_p0)  ;;  %v898_v60 = vld [vmem:[#allocation2 + $0xb0] sm:$0xff] (!%p1120_p0) }
 0x182   : > { %v1183_v0 = vpop.f32.mrb[29].mxu0  ;;  %v1231_v2 = vpop.f32.mrb[29].mxu1  ;;  %957 = vst [vmem:[%s1472_s15 + $0x50] sm:$0xff] (!%p1120_p0), %v925_v39  ;;  %963 = vst [vmem:[%s1472_s15 + $0x80] sm:$0xff] (!%p1120_p0), %v931_v51 }
 0x183   : > { %v1184_v3 = vadd.f32 %v1183_v0, %v1182_v61  ;;  %v1232_v4 = vadd.f32 %v1231_v2, %v1230_v62  ;;  %v1185_v5 = vpop.f32.mrb[30].mxu0  ;;  %v1233_v6 = vpop.f32.mrb[30].mxu1  ;;  %875 = sbr.rel (%p1120_p0) target bundleno = 405 (0x195), region = 40  ;;  %958 = vst [vmem:[%s1472_s15 + $0x58] sm:$0xff] (!%p1120_p0), %v926_v43  ;;  %v935_v61 = vadd.f32 (!%p1120_p0), %v1529_v18, %v896_v58  ;;  %v936_v62 = vadd.f32 (!%p1120_p0), %v1529_v18, %v897_v59  ;;  %v899_v0 = vld [vmem:[#allocation2 + $0xb8] sm:$0xff] (!%p1120_p0)  ;;  %v901_v2 = vld [vmem:[#allocation2 + $0xc8] sm:$0xff] (!%p1120_p0) }
 0x184   : > { %v1186_v8 = vpop.f32.mrb[31].mxu0  ;;  %v1234_v10 = vpop.f32.mrb[31].mxu1  ;;  %964 = vst [vmem:[%s1472_s15 + $0x88] sm:$0xff] (!%p1120_p0), %v932_v55  ;;  %965 = vst [vmem:[%s1472_s15 + $0x90] sm:$0xff] (!%p1120_p0), %v933_v56 }
 0x185   : > { %v821_v11 = vadd.f32 %v1184_v3, %v308_v63  ;;  %v837_v12 = vadd.f32 %v1232_v4, %v324_v1  ;;  %v1187_v13 = vadd.f32 %v1186_v8, %v1185_v5  ;;  %v1235_v14 = vadd.f32 %v1234_v10, %v1233_v6  ;;  %v900_v1 = vld [vmem:[#allocation2 + $0xc0] sm:$0xff] (!%p1120_p0)  ;;  %966 = vst [vmem:[%s1472_s15 + $0x98] sm:$0xff] (!%p1120_p0), %v934_v57  ;;  %v902_v6 = vld [vmem:[#allocation2 + $0xd0] sm:$0xff] (!%p1120_p0) }
 0x186   : > { %v888_v41 = vld [vmem:[#allocation2 + $0x60] sm:$0xff] (!%p1120_p0)  ;;  %v937_v63 = vadd.f32 (!%p1120_p0), %v1529_v18, %v898_v60  ;;  %v938_v3 = vadd.f32 (!%p1120_p0), %v1529_v18, %v899_v0  ;;  %v939_v4 = vadd.f32 (!%p1120_p0), %v1529_v18, %v900_v1  ;;  %v940_v5 = vadd.f32 (!%p1120_p0), %v1529_v18, %v901_v2  ;;  %967 = vst [vmem:[%s1472_s15 + $0xa0] sm:$0xff] (!%p1120_p0), %v935_v61 }
 0x187   : > { %853 = vst [vmem:[#allocation2 + $0x70] sm:$0xff] %v821_v11  ;;  %869 = vst [vmem:[#allocation2 + $0xf0] sm:$0xff] %v837_v12  ;;  %v822_v15 = vadd.f32 %v1187_v13, %v309_v7  ;;  %v838_v16 = vadd.f32 %v1235_v14, %v325_v9  ;;  %v927_v44 = vadd.f32 (!%p1120_p0), %v1529_v18, %v888_v41  ;;  %v903_v7 = vld [vmem:[#allocation2 + $0xd8] sm:$0xff] (!%p1120_p0)  ;;  %v904_v8 = vld [vmem:[#allocation2 + $0xe0] sm:$0xff] (!%p1120_p0) }
 0x188   : > { %v889_v42 = vld [vmem:[#allocation2 + $0x68] sm:$0xff] (!%p1120_p0)  ;;  %968 = vst [vmem:[%s1472_s15 + $0xa8] sm:$0xff] (!%p1120_p0), %v936_v62  ;;  %969 = vst [vmem:[%s1472_s15 + $0xb0] sm:$0xff] (!%p1120_p0), %v937_v63  ;;  %v941_v9 = vadd.f32 (!%p1120_p0), %v1529_v18, %v902_v6  ;;  %v942_v10 = vadd.f32 (!%p1120_p0), %v1529_v18, %v903_v7  ;;  %v943_v11 = vadd.f32 (!%p1120_p0), %v1529_v18, %v904_v8 }
 0x189   : > { %854 = vst [vmem:[#allocation2 + $0x78] sm:$0xff] %v822_v15  ;;  %870 = vst [vmem:[#allocation2 + $0xf8] sm:$0xff] %v838_v16  ;;  %v928_v45 = vadd.f32 (!%p1120_p0), %v1529_v18, %v889_v42  ;;  %v905_v12 = vld [vmem:[#allocation2 + $0xe8] sm:$0xff] (!%p1120_p0) }
 0x18a   : > { %959 = vst [vmem:[%s1472_s15 + $0x60] sm:$0xff] %v927_v44  ;;  %970 = vst [vmem:[%s1472_s15 + $0xb8] sm:$0xff] %v938_v3  ;;  %v944_v15 = vadd.f32 %v1529_v18, %v905_v12 }
 0x18b   : > { %960 = vst [vmem:[%s1472_s15 + $0x68] sm:$0xff] %v928_v45  ;;  %971 = vst [vmem:[%s1472_s15 + $0xc0] sm:$0xff] %v939_v4 }
 0x18c   : > { %972 = vst [vmem:[%s1472_s15 + $0xc8] sm:$0xff] %v940_v5  ;;  %973 = vst [vmem:[%s1472_s15 + $0xd0] sm:$0xff] %v941_v9 }
 0x18d   : > { %974 = vst [vmem:[%s1472_s15 + $0xd8] sm:$0xff] %v942_v10  ;;  %975 = vst [vmem:[%s1472_s15 + $0xe0] sm:$0xff] %v943_v11 }
 0x18e   : > { %v890_v46 = vld [vmem:[#allocation2 + $0x70] sm:$0xff]  ;;  %976 = vst [vmem:[%s1472_s15 + $0xe8] sm:$0xff] %v944_v15 }
 0x18f   : > { %v929_v49 = vadd.f32 %v1529_v18, %v890_v46  ;;  %v906_v13 = vld [vmem:[#allocation2 + $0xf0] sm:$0xff] }
 0x190   : > { %v891_v47 = vld [vmem:[#allocation2 + $0x78] sm:$0xff]  ;;  %v945_v16 = vadd.f32 %v1529_v18, %v906_v13 }
 0x191   : > { %v930_v50 = vadd.f32 %v1529_v18, %v891_v47  ;;  %961 = vst [vmem:[%s1472_s15 + $0x70] sm:$0xff] %v929_v49  ;;  %v907_v14 = vld [vmem:[#allocation2 + $0xf8] sm:$0xff] }
 0x192   : > { %v946_v17 = vadd.f32 %v1529_v18, %v907_v14  ;;  %977 = vst [vmem:[%s1472_s15 + $0xf0] sm:$0xff] %v945_v16 }
 0x193   : > { %962 = vst [vmem:[%s1472_s15 + $0x78] sm:$0xff] %v930_v50 }
 0x194   : > { %978 = vst [vmem:[%s1472_s15 + $0xf8] sm:$0xff] %v946_v17 }
 0x195 PF: > { %s35_s3 = sadd.s32 1, %s1385_s3  }
 0x196   : > { %p32_p1 = scmp.ge.s32.totalorder %s35_s3, 6  }
 0x198   :  { %34 = sbr.rel (!%p32_p1) target bundleno = 47 (0x2f), region = 73 }

// kernel: forward.2
= control target key start
LH: loop header
LB: loop body
LE: loop exit
PB: predicated region body
PF: predicated region fallthrough
CT: control target
= control target key end

     0   :  { %s1614_s0 = inlined_call_operand.vmem [shape: s32[4], index: 0, kind: input, shape index: {}]   ;;  %s1615_s4 = inlined_call_operand.vmem [shape: bf16[2,2,256,256], index: 4, kind: input, shape index: {}]   ;;  %s1616_s5 = inlined_call_operand.vmem [shape: bf16[512,128], index: 5, kind: input, shape index: {}]   ;;  %s1617_s6 = inlined_call_operand.vmem [shape: f32[1,128], index: 6, kind: input, shape index: {}]   ;;  %s1618_s7 = inlined_call_operand.vmem [shape: bf16[512,128], index: 7, kind: output, shape index: {}]   ;;  %s1619_s1 = inlined_call_operand.vmem [shape: s32[4], index: 1, kind: input, shape index: {}]   ;;  %s1620_s2 = inlined_call_operand.vmem [shape: s32[4], index: 2, kind: input, shape index: {}]   ;;  %s1621_s3 = inlined_call_operand.vmem [shape: s32[4], index: 3, kind: input, shape index: {}]  }
   0x1   :  { %s12_s26 = sshll.u32 %s1614_s0, 4  ;;  %s16_s29 = sshll.u32 %s1619_s1, 4  ;;  %s13_s26 = int_to_ptr.vmem [resolvable:$true] %s12_s26  ;;  %s17_s29 = int_to_ptr.vmem [resolvable:$true] %s16_s29 }
   0x2   :  { %s1361_s30 = scalar_lea.vmem %s13_s26, 16  ;;  %p1366_p1 = scmp.lt.s32.totalorder %s13_s26, %s13_s26 }
   0x3   :  { %p1362_p0 = scmp.ne.s32.totalorder %s13_s26, %s1361_s30  ;;  %p1367_p2 = scmp.lt.s32.totalorder %s1361_s30, %s1361_s30 }
   0x5   :  { %p1368_p3 = por %p1367_p2, %p1366_p1 }
   0x7   :  { %p1369_p4 = pnand %p1368_p3, %p1362_p0 }
   0x9   :  { %1372 = shalt.err (!%p1369_p4)  }
   0xa   :  { %s1419_s8 = smov [#allocation4]   ;;  %s1373_s9 = scalar_lea.vmem %s17_s29, 16 }
   0xb   :  { %15 = dma.vmem_to_smem %s13_s26, 16, %s1419_s8, [#allocation3] }
   0xc   :  { %p1374_p5 = scmp.ne.s32.totalorder %s17_s29, %s1373_s9  ;;  %p1378_p6 = scmp.lt.s32.totalorder %s17_s29, %s17_s29 }
   0xd   :  { %p1379_p7 = scmp.lt.s32.totalorder %s1373_s9, %s1373_s9 }
   0xf   :  { %p1380_p8 = por %p1379_p7, %p1378_p6 }
  0x11   :  { %p1381_p9 = pnand %p1380_p8, %p1374_p5 }
  0x13   :  { %1384 = shalt.err (!%p1381_p9)  }
  0x14   :  { %s1420_s0 = smov [#allocation5]   ;;  %s20_s11 = sshll.u32 %s1620_s2, 4  ;;  %s21_s11 = int_to_ptr.vmem [resolvable:$true] %s20_s11 }
  0x15   :  { %19 = dma.vmem_to_smem %s17_s29, 16, %s1420_s0, [#allocation3] }
  0x16   :  { %s24_s14 = sshll.u32 %s1621_s3, 4  ;;  %s1385_s15 = scalar_lea.vmem %s21_s11, 16  ;;  %s25_s14 = int_to_ptr.vmem [resolvable:$true] %s24_s14 }
  0x17   :  { %p1386_p10 = scmp.ne.s32.totalorder %s21_s11, %s1385_s15  ;;  %p1390_p11 = scmp.lt.s32.totalorder %s21_s11, %s21_s11 }
  0x18   :  { %p1391_p12 = scmp.lt.s32.totalorder %s1385_s15, %s1385_s15 }
  0x1a   :  { %p1392_p13 = por %p1391_p12, %p1390_p11 }
  0x1c   :  { %p1393_p0 = pnand %p1392_p13, %p1386_p10 }
  0x1e   :  { %1396 = shalt.err (!%p1393_p0)  }
  0x1f   :  { %s1421_s16 = smov [#allocation6]   ;;  %s1397_s17 = scalar_lea.vmem %s25_s14, 16 }
  0x20   :  { %23 = dma.vmem_to_smem %s21_s11, 16, %s1421_s16, [#allocation3] }
  0x21   :  { %p1398_p1 = scmp.ne.s32.totalorder %s25_s14, %s1397_s17  ;;  %p1402_p2 = scmp.lt.s32.totalorder %s25_s14, %s25_s14 }
  0x22   :  { %p1403_p3 = scmp.lt.s32.totalorder %s1397_s17, %s1397_s17 }
  0x24   :  { %p1404_p4 = por %p1403_p3, %p1402_p2 }
  0x26   :  { %p1405_p5 = pnand %p1404_p4, %p1398_p1 }
  0x28   :  { %1408 = shalt.err (!%p1405_p5)  }
  0x29   :  { %s1422_s2 = smov [#allocation7]  }
  0x2a   :  { %27 = dma.vmem_to_smem %s25_s14, 16, %s1422_s2, [#allocation3] }
  0x2b   :  { %1413 = dma.done.wait [#allocation3], 64 }
  0x2c   :  { %1414 = vsyncadd [#allocation3], 4294967232 }
  0x2d   :  { %29 = sfence }
  0x2e   :  { %s1476_s3 = smov 0  }
  0x2f LB: > { %s1482_s18 = sadd.s32 4294967295, %s1417_s3   ;;  %p1095_p6 = scmp.ge.s32.totalorder %s1417_s3, 1  ;;  %s1417_s3 = sphi %s1476_s3, %s35_s3  }
  0x30   : > { %p190_p7 = scmp.lt.s32.totalorder %s1417_s3, 5 }
  0x32   : > { %p191_p8 = pnand %p1095_p6, %p190_p7 }
  0x33   : > { %s227_s19 = sld [smem:[#allocation4 + %s1482_s18]] (!%p191_p8) }
  0x34   : > { %194 = sbr.rel (%p191_p8) target bundleno = 409 (0x199), region = 32  ;;  %s228_s20 = sld [smem:[#allocation5 + %s1482_s18]] (!%p191_p8) }
  0x35   : > { %s240_s21 = sld [smem:[#allocation5 + %s1482_s18]] (!%p191_p8) }
  0x36   : > { %s248_s22 = sld [smem:[#allocation4 + %s1482_s18]] (!%p191_p8) }
  0x37   : > { %s257_s23 = sld [smem:[#allocation6 + %s1482_s18]] (!%p191_p8) }
  0x39   : > { %p229_p9 = scmp.lt.s32.totalorder (!%p191_p8), %s227_s19, 1 }
  0x3a   : > { %p231_p10 = scmp.lt.s32.totalorder (!%p191_p8), %s228_s20, 1 }
  0x3b   : > { %s1099_s24 = sshll.u32 %s240_s21, 5  ;;  %s1623_s19 = smov (!%p229_p9, %s227_s19), 1 }
  0x3c   : > { %s1101_s25 = sshll.u32 %s248_s22, 4  ;;  %s1625_s20 = smov (!%p231_p10, %s228_s20), 1 }
  0x3d   : > { %s1097_s26 = sshll.u32 %s1623_s19, 7  ;;  %s1096_s27 = sshll.u32 %s1625_s20, 6 }
  0x3e   : > { %p242_p11 = scmp.lt.s32.totalorder %s1099_s24, 63  ;;  %s235_s28 = sadd.s32 %s1097_s26, %s1096_s27 }
  0x3f   : > { %p250_p12 = scmp.lt.s32.totalorder %s1101_s25, 31  ;;  %s1098_s29 = sshll.u32 %s235_s28, 2 }
  0x40   : > { %s1494_s9 = scalar_lea.vmem %s1615_s4, %s1098_s29  ;;  %s1627_s24 = smov (!%p242_p11, %s1099_s24), 63 }
  0x41   : > { %s1629_s25 = smov (!%p250_p12, %s1101_s25), 31  ;;  %s1100_s0 = sshll.u32 %s1627_s24, 2 }
  0x42   : > { %s1499_s11 = scalar_lea.vmem %s1616_s5, %s1100_s0  ;;  %s1102_s12 = sshll.u32 %s1629_s25, 3 }
  0x43   : > { %s1504_s15 = scalar_lea.vmem %s1618_s7, %s1102_s12  ;;  %p1103_p13 = scmp.ne.s32.totalorder %s257_s23, 1 }
  0x44   : > { %v1423_v0 = vmov (!%p1103_p13), 0.0  }
  0x45   : > { %261 = sbr.rel (%p1103_p13) target bundleno = 85 (0x55), region = 36  ;;  %262 = vst [vmem:[#allocation2] sm:$0xff] (!%p1103_p13), %v1423_v0  ;;  %263 = vst [vmem:[#allocation2 + $0x8] sm:$0xff] (!%p1103_p13), %v1423_v0 }
  0x46   : > { %264 = vst [vmem:[#allocation2 + $0x10] sm:$0xff] (!%p1103_p13), %v1423_v0  ;;  %265 = vst [vmem:[#allocation2 + $0x18] sm:$0xff] (!%p1103_p13), %v1423_v0 }
  0x47   : > { %266 = vst [vmem:[#allocation2 + $0x20] sm:$0xff] (!%p1103_p13), %v1423_v0  ;;  %267 = vst [vmem:[#allocation2 + $0x28] sm:$0xff] (!%p1103_p13), %v1423_v0 }
  0x48   : > { %268 = vst [vmem:[#allocation2 + $0x30] sm:$0xff] (!%p1103_p13), %v1423_v0  ;;  %269 = vst [vmem:[#allocation2 + $0x38] sm:$0xff] (!%p1103_p13), %v1423_v0 }
  0x49   : > { %270 = vst [vmem:[#allocation2 + $0x40] sm:$0xff] (!%p1103_p13), %v1423_v0  ;;  %271 = vst [vmem:[#allocation2 + $0x48] sm:$0xff] (!%p1103_p13), %v1423_v0 }
  0x4a   : > { %272 = vst [vmem:[#allocation2 + $0x50] sm:$0xff] (!%p1103_p13), %v1423_v0  ;;  %273 = vst [vmem:[#allocation2 + $0x58] sm:$0xff] (!%p1103_p13), %v1423_v0 }
  0x4b   : > { %274 = vst [vmem:[#allocation2 + $0x60] sm:$0xff] (!%p1103_p13), %v1423_v0  ;;  %275 = vst [vmem:[#allocation2 + $0x68] sm:$0xff] (!%p1103_p13), %v1423_v0 }
  0x4c   : > { %276 = vst [vmem:[#allocation2 + $0x70] sm:$0xff] %v1423_v0  ;;  %277 = vst [vmem:[#allocation2 + $0x78] sm:$0xff] %v1423_v0 }
  0x4d   : > { %278 = vst [vmem:[#allocation2 + $0x80] sm:$0xff] %v1423_v0  ;;  %279 = vst [vmem:[#allocation2 + $0x88] sm:$0xff] %v1423_v0 }
  0x4e   : > { %280 = vst [vmem:[#allocation2 + $0x90] sm:$0xff] %v1423_v0  ;;  %281 = vst [vmem:[#allocation2 + $0x98] sm:$0xff] %v1423_v0 }
  0x4f   : > { %282 = vst [vmem:[#allocation2 + $0xa0] sm:$0xff] %v1423_v0  ;;  %283 = vst [vmem:[#allocation2 + $0xa8] sm:$0xff] %v1423_v0 }
  0x50   : > { %284 = vst [vmem:[#allocation2 + $0xb0] sm:$0xff] %v1423_v0  ;;  %285 = vst [vmem:[#allocation2 + $0xb8] sm:$0xff] %v1423_v0 }
  0x51   : > { %286 = vst [vmem:[#allocation2 + $0xc0] sm:$0xff] %v1423_v0  ;;  %287 = vst [vmem:[#allocation2 + $0xc8] sm:$0xff] %v1423_v0 }
  0x52   : > { %288 = vst [vmem:[#allocation2 + $0xd0] sm:$0xff] %v1423_v0  ;;  %289 = vst [vmem:[#allocation2 + $0xd8] sm:$0xff] %v1423_v0 }
  0x53   : > { %290 = vst [vmem:[#allocation2 + $0xe0] sm:$0xff] %v1423_v0  ;;  %291 = vst [vmem:[#allocation2 + $0xe8] sm:$0xff] %v1423_v0 }
  0x54   : > { %292 = vst [vmem:[#allocation2 + $0xf0] sm:$0xff] %v1423_v0  ;;  %293 = vst [vmem:[#allocation2 + $0xf8] sm:$0xff] %v1423_v0 }
  0x55 PF: > { %v1297_v1 = vld [vmem:[%s1499_s11 + $0x40] sm:$0xff]   ;;  %v1299_v3 = vld [vmem:[%s1499_s11 + $0x48] sm:$0xff]   ;;  %v1301_v5 = vld [vmem:[%s1499_s11 + $0x50] sm:$0xff]   ;;  %s1555_s16 = sld [smem:[#allocation7 + %s1482_s18]] }
  0x56   : > { %v1298_v2 = vld [vmem:[%s1499_s11] sm:$0xff]   ;;  %1156 = vmatprep.subr.bf16.mxu0 %v1297_v1  ;;  %1268 = vmatprep.subr.bf16.mxu1 %v1297_v1  ;;  %v1300_v4 = vld [vmem:[%s1499_s11 + $0x8] sm:$0xff]   ;;  %v1302_v6 = vld [vmem:[%s1499_s11 + $0x10] sm:$0xff]  }
  0x57   : > { %1157 = vmatpush3.bf16.msra.mxu0 %v1298_v2  ;;  %1276 = vmatpush3.bf16.msra.mxu1 %v1298_v2  ;;  %v1303_v7 = vld [vmem:[%s1499_s11 + $0x58] sm:$0xff]   ;;  %v1305_v9 = vld [vmem:[%s1499_s11 + $0x60] sm:$0xff]   ;;  %v1307_v11 = vld [vmem:[%s1499_s11 + $0x68] sm:$0xff]  }
  0x58   : > { %1158 = vmatprep.subr.bf16.mxu0 %v1299_v3  ;;  %1269 = vmatprep.subr.bf16.mxu1 %v1299_v3  ;;  %v1304_v8 = vld [vmem:[%s1499_s11 + $0x18] sm:$0xff]   ;;  %v1306_v10 = vld [vmem:[%s1499_s11 + $0x20] sm:$0xff]   ;;  %v1308_v14 = vld [vmem:[%s1499_s11 + $0x28] sm:$0xff]  }
  0x59   : > { %v1315_v12 = vld [vmem:[%s1494_s9 + $0x4] ss:$8 sps:$4 sm:$0xff]   ;;  %v1309_v15 = vld [vmem:[%s1499_s11 + $0x70] sm:$0xff]   ;;  %v1311_v17 = vld [vmem:[%s1499_s11 + $0x78] sm:$0xff]  }
  0x5a   : > { %v1318_v13 = vld [vmem:[%s1494_s9 + $0x84] ss:$8 sps:$4 sm:$0xff]   ;;  %678 = vmatprep.mubr.bf16.mxu0 %v1315_v12  ;;  %v1310_v16 = vld [vmem:[%s1499_s11 + $0x30] sm:$0xff]   ;;  %v1312_v18 = vld [vmem:[%s1499_s11 + $0x38] sm:$0xff]  }
  0x5b   : > { %1159 = vmatpush3.bf16.msra.mxu0 %v1300_v4  ;;  %1277 = vmatpush3.bf16.msra.mxu1 %v1300_v4  ;;  %v1313_v19 = vld [vmem:[%s1494_s9] ss:$8 sps:$4 sm:$0xff]   ;;  %v1319_v21 = vld [vmem:[%s1494_s9 + $0x14] ss:$8 sps:$4 sm:$0xff]   ;;  %v1323_v23 = vld [vmem:[%s1494_s9 + $0x10] ss:$8 sps:$4 sm:$0xff]  }
  0x5c   : > { %1160 = vmatprep.subr.bf16.mxu0 %v1301_v5  ;;  %1270 = vmatprep.subr.bf16.mxu1 %v1301_v5  ;;  %v1316_v20 = vld [vmem:[%s1494_s9 + $0x80] ss:$8 sps:$4 sm:$0xff]   ;;  %v1321_v22 = vld [vmem:[%s1494_s9 + $0x94] ss:$8 sps:$4 sm:$0xff]   ;;  %v1324_v24 = vld [vmem:[%s1494_s9 + $0x90] ss:$8 sps:$4 sm:$0xff]  }
  0x5d   : > { %742 = vmatprep.mubr.bf16.mxu1 %v1318_v13  ;;  %v1325_v25 = vld [vmem:[%s1494_s9 + $0x24] ss:$8 sps:$4 sm:$0xff]   ;;  %v1329_v27 = vld [vmem:[%s1494_s9 + $0x20] ss:$8 sps:$4 sm:$0xff]   ;;  %v1331_v29 = vld [vmem:[%s1494_s9 + $0x34] ss:$8 sps:$4 sm:$0xff]  }
  0x5e   : > { %v1327_v26 = vld [vmem:[%s1494_s9 + $0xa4] ss:$8 sps:$4 sm:$0xff]   ;;  %v1330_v28 = vld [vmem:[%s1494_s9 + $0xa0] ss:$8 sps:$4 sm:$0xff]   ;;  %v1333_v30 = vld [vmem:[%s1494_s9 + $0xb4] ss:$8 sps:$4 sm:$0xff]  }
  0x5f   : > { %1161 = vmatpush3.bf16.msra.mxu0 %v1302_v6  ;;  %1278 = vmatpush3.bf16.msra.mxu1 %v1302_v6  ;;  %v1335_v31 = vld [vmem:[%s1494_s9 + $0x30] ss:$8 sps:$4 sm:$0xff]   ;;  %v1337_v33 = vld [vmem:[%s1494_s9 + $0x44] ss:$8 sps:$4 sm:$0xff]   ;;  %v1341_v35 = vld [vmem:[%s1494_s9 + $0x40] ss:$8 sps:$4 sm:$0xff]  }
  0x60   : > { %1162 = vmatprep.subr.bf16.mxu0 %v1303_v7  ;;  %1271 = vmatprep.subr.bf16.mxu1 %v1303_v7  ;;  %v1336_v32 = vld [vmem:[%s1494_s9 + $0xb0] ss:$8 sps:$4 sm:$0xff]   ;;  %v1339_v34 = vld [vmem:[%s1494_s9 + $0xc4] ss:$8 sps:$4 sm:$0xff]   ;;  %v1342_v36 = vld [vmem:[%s1494_s9 + $0xc0] ss:$8 sps:$4 sm:$0xff]  }
  0x61   : > { %v1343_v37 = vld [vmem:[%s1494_s9 + $0x54] ss:$8 sps:$4 sm:$0xff]   ;;  %v1347_v39 = vld [vmem:[%s1494_s9 + $0x50] ss:$8 sps:$4 sm:$0xff]   ;;  %v1349_v41 = vld [vmem:[%s1494_s9 + $0x64] ss:$8 sps:$4 sm:$0xff]  }
  0x62   : > { %v1345_v38 = vld [vmem:[%s1494_s9 + $0xd4] ss:$8 sps:$4 sm:$0xff]   ;;  %v1348_v40 = vld [vmem:[%s1494_s9 + $0xd0] ss:$8 sps:$4 sm:$0xff]   ;;  %v1351_v42 = vld [vmem:[%s1494_s9 + $0xe4] ss:$8 sps:$4 sm:$0xff]  }
  0x63   : > { %1163 = vmatpush3.bf16.msra.mxu0 %v1304_v8  ;;  %1279 = vmatpush3.bf16.msra.mxu1 %v1304_v8  ;;  %v1353_v43 = vld [vmem:[%s1494_s9 + $0x60] ss:$8 sps:$4 sm:$0xff]   ;;  %v1355_v45 = vld [vmem:[%s1494_s9 + $0x74] ss:$8 sps:$4 sm:$0xff]   ;;  %v1359_v47 = vld [vmem:[%s1494_s9 + $0x70] ss:$8 sps:$4 sm:$0xff]  }
  0x64   : > { %1164 = vmatprep.subr.bf16.mxu0 %v1305_v9  ;;  %1272 = vmatprep.subr.bf16.mxu1 %v1305_v9  ;;  %v1354_v44 = vld [vmem:[%s1494_s9 + $0xe0] ss:$8 sps:$4 sm:$0xff]   ;;  %v1357_v46 = vld [vmem:[%s1494_s9 + $0xf4] ss:$8 sps:$4 sm:$0xff]   ;;  %v1360_v48 = vld [vmem:[%s1494_s9 + $0xf0] ss:$8 sps:$4 sm:$0xff]  }
  0x65   : > { %v294_v51 = vld [vmem:[#allocation2] sm:$0xff]  ;;  %v295_v59 = vld [vmem:[#allocation2 + $0x8] sm:$0xff]  ;;  %v296_v7 = vld [vmem:[#allocation2 + $0x10] sm:$0xff]  ;;  %p1152_p0 = scmp.ne.s32.totalorder %s1555_s16, 1 }
  0x66   : > { %v310_v53 = vld [vmem:[#allocation2 + $0x80] sm:$0xff]  ;;  %v311_v61 = vld [vmem:[#allocation2 + $0x88] sm:$0xff]  ;;  %v312_v9 = vld [vmem:[#allocation2 + $0x90] sm:$0xff] }
  0x67   : > { %1165 = vmatpush3.bf16.msra.mxu0 %v1306_v10  ;;  %1280 = vmatpush3.bf16.msra.mxu1 %v1306_v10 }
  0x68   : > { %1166 = vmatprep.subr.bf16.mxu0 %v1307_v11  ;;  %1273 = vmatprep.subr.bf16.mxu1 %v1307_v11 }
  0x6b   : > { %1167 = vmatpush3.bf16.msra.mxu0 %v1308_v14  ;;  %1281 = vmatpush3.bf16.msra.mxu1 %v1308_v14 }
  0x6c   : > { %1168 = vmatprep.subr.bf16.mxu0 %v1309_v15  ;;  %1274 = vmatprep.subr.bf16.mxu1 %v1309_v15  ;;  %v297_v15 = vld [vmem:[#allocation2 + $0x18] sm:$0xff] }
  0x6f   : > { %1169 = vmatpush3.bf16.msra.mxu0 %v1310_v16  ;;  %1282 = vmatpush3.bf16.msra.mxu1 %v1310_v16 }
  0x70   : > { %1170 = vmatprep.subr.bf16.mxu0 %v1311_v17  ;;  %1275 = vmatprep.subr.bf16.mxu1 %v1311_v17  ;;  %v313_v17 = vld [vmem:[#allocation2 + $0x98] sm:$0xff] }
  0x73   : > { %1171 = vmatpush3.bf16.msra.mxu0 %v1312_v18  ;;  %1283 = vmatpush3.bf16.msra.mxu1 %v1312_v18 }
  0x76   : > { %679 = vmatmul.mubr.bf16.vlgmr.msra.gmra.mrb[0].mxu0 %v1313_v19  ;;  %743 = vmatmul.mubr.bf16.vlgmr.msra.gmra.mrb[0].mxu1 %v1316_v20 }
  0x77   : > { %686 = vmatprep.mubr.bf16.mxu0 %v1319_v21  ;;  %750 = vmatprep.mubr.bf16.mxu1 %v1321_v22 }
  0x7e   : > { %687 = vmatmul.mubr.bf16.gmra.mrb[4].mxu0 %v1323_v23  ;;  %751 = vmatmul.mubr.bf16.gmra.mrb[4].mxu1 %v1324_v24 }
  0x7f   : > { %694 = vmatprep.mubr.bf16.mxu0 %v1325_v25  ;;  %758 = vmatprep.mubr.bf16.mxu1 %v1327_v26 }
  0x86   : > { %695 = vmatmul.mubr.bf16.gmra.mrb[8].mxu0 %v1329_v27  ;;  %759 = vmatmul.mubr.bf16.gmra.mrb[8].mxu1 %v1330_v28  ;;  %v298_v27 = vld [vmem:[#allocation2 + $0x20] sm:$0xff] }
  0x87   : > { %702 = vmatprep.mubr.bf16.mxu0 %v1331_v29  ;;  %766 = vmatprep.mubr.bf16.mxu1 %v1333_v30  ;;  %v314_v29 = vld [vmem:[#allocation2 + $0xa0] sm:$0xff] }
  0x8e   : > { %703 = vmatmul.mubr.bf16.gmra.mrb[12].mxu0 %v1335_v31  ;;  %767 = vmatmul.mubr.bf16.gmra.mrb[12].mxu1 %v1336_v32 }
  0x8f   : > { %710 = vmatprep.mubr.bf16.mxu0 %v1337_v33  ;;  %774 = vmatprep.mubr.bf16.mxu1 %v1339_v34 }
  0x96   : > { %711 = vmatmul.mubr.bf16.gmra.mrb[16].mxu0 %v1341_v35  ;;  %775 = vmatmul.mubr.bf16.gmra.mrb[16].mxu1 %v1342_v36  ;;  %v299_v35 = vld [vmem:[#allocation2 + $0x28] sm:$0xff] }
  0x97   : > { %718 = vmatprep.mubr.bf16.mxu0 %v1343_v37  ;;  %782 = vmatprep.mubr.bf16.mxu1 %v1345_v38  ;;  %v315_v37 = vld [vmem:[#allocation2 + $0xa8] sm:$0xff] }
  0x9e   : > { %719 = vmatmul.mubr.bf16.gmra.mrb[20].mxu0 %v1347_v39  ;;  %783 = vmatmul.mubr.bf16.gmra.mrb[20].mxu1 %v1348_v40 }
  0x9f   : > { %726 = vmatprep.mubr.bf16.mxu0 %v1349_v41  ;;  %790 = vmatprep.mubr.bf16.mxu1 %v1351_v42 }
  0xa6   : > { %727 = vmatmul.mubr.bf16.gmra.mrb[24].mxu0 %v1353_v43  ;;  %791 = vmatmul.mubr.bf16.gmra.mrb[24].mxu1 %v1354_v44 }
  0xa7   : > { %734 = vmatprep.mubr.bf16.mxu0 %v1355_v45  ;;  %798 = vmatprep.mubr.bf16.mxu1 %v1357_v46 }
  0xae   : > { %735 = vmatmul.mubr.bf16.gmra.mrb[28].mxu0 %v1359_v47  ;;  %799 = vmatmul.mubr.bf16.gmra.mrb[28].mxu1 %v1360_v48  ;;  %v300_v47 = vld [vmem:[#allocation2 + $0x30] sm:$0xff] }
 0x149   : > { %v1172_v49 = vpop.f32.mrb[0].mxu0  ;;  %v1220_v50 = vpop.f32.mrb[0].mxu1 }
 0x14a   : > { %v1173_v52 = vpop.f32.mrb[1].mxu0  ;;  %v1221_v54 = vpop.f32.mrb[1].mxu1 }
 0x14b   : > { %v1174_v55 = vadd.f32 %v1173_v52, %v1172_v49  ;;  %v1222_v56 = vadd.f32 %v1221_v54, %v1220_v50  ;;  %v1175_v57 = vpop.f32.mrb[2].mxu0  ;;  %v1223_v58 = vpop.f32.mrb[2].mxu1  ;;  %v316_v49 = vld [vmem:[#allocation2 + $0xb0] sm:$0xff] }
 0x14c   : > { %v1176_v60 = vpop.f32.mrb[3].mxu0  ;;  %v1224_v62 = vpop.f32.mrb[3].mxu1 }
 0x14d   : > { %v807_v63 = vadd.f32 %v1174_v55, %v294_v51  ;;  %v823_v0 = vadd.f32 %v1222_v56, %v310_v53  ;;  %v1177_v1 = vadd.f32 %v1176_v60, %v1175_v57  ;;  %v1225_v2 = vadd.f32 %v1224_v62, %v1223_v58  ;;  %v301_v55 = vld [vmem:[#allocation2 + $0x38] sm:$0xff] }
 0x14e   : > { %v317_v57 = vld [vmem:[#allocation2 + $0xb8] sm:$0xff] }
 0x14f   : > { %839 = vst [vmem:[#allocation2] sm:$0xff] %v807_v63  ;;  %855 = vst [vmem:[#allocation2 + $0x80] sm:$0xff] %v823_v0  ;;  %v808_v3 = vadd.f32 %v1177_v1, %v295_v59  ;;  %v824_v4 = vadd.f32 %v1225_v2, %v311_v61 }
 0x151   : > { %840 = vst [vmem:[#allocation2 + $0x8] sm:$0xff] %v808_v3  ;;  %856 = vst [vmem:[#allocation2 + $0x88] sm:$0xff] %v824_v4  ;;  %v1178_v5 = vpop.f32.mrb[4].mxu0  ;;  %v1226_v6 = vpop.f32.mrb[4].mxu1  ;;  %v302_v3 = vld [vmem:[#allocation2 + $0x40] sm:$0xff] }
 0x152   : > { %v1179_v8 = vpop.f32.mrb[5].mxu0  ;;  %v1227_v10 = vpop.f32.mrb[5].mxu1 }
 0x153   : > { %v1180_v11 = vadd.f32 %v1179_v8, %v1178_v5  ;;  %v1228_v12 = vadd.f32 %v1227_v10, %v1226_v6  ;;  %v1181_v13 = vpop.f32.mrb[6].mxu0  ;;  %v1229_v14 = vpop.f32.mrb[6].mxu1  ;;  %v318_v5 = vld [vmem:[#allocation2 + $0xc0] sm:$0xff] }
 0x154   : > { %v1182_v16 = vpop.f32.mrb[7].mxu0  ;;  %v1230_v18 = vpop.f32.mrb[7].mxu1 }
 0x155   : > { %v809_v19 = vadd.f32 %v1180_v11, %v296_v7  ;;  %v825_v20 = vadd.f32 %v1228_v12, %v312_v9  ;;  %v1183_v21 = vadd.f32 %v1182_v16, %v1181_v13  ;;  %v1231_v22 = vadd.f32 %v1230_v18, %v1229_v14  ;;  %v303_v11 = vld [vmem:[#allocation2 + $0x48] sm:$0xff] }
 0x156   : > { %v319_v13 = vld [vmem:[#allocation2 + $0xc8] sm:$0xff] }
 0x157   : > { %841 = vst [vmem:[#allocation2 + $0x10] sm:$0xff] %v809_v19  ;;  %857 = vst [vmem:[#allocation2 + $0x90] sm:$0xff] %v825_v20  ;;  %v810_v23 = vadd.f32 %v1183_v21, %v297_v15  ;;  %v826_v24 = vadd.f32 %v1231_v22, %v313_v17 }
 0x159   : > { %842 = vst [vmem:[#allocation2 + $0x18] sm:$0xff] %v810_v23  ;;  %858 = vst [vmem:[#allocation2 + $0x98] sm:$0xff] %v826_v24  ;;  %v1184_v25 = vpop.f32.mrb[8].mxu0  ;;  %v1232_v26 = vpop.f32.mrb[8].mxu1  ;;  %v304_v23 = vld [vmem:[#allocation2 + $0x50] sm:$0xff] }
 0x15a   : > { %v1185_v28 = vpop.f32.mrb[9].mxu0  ;;  %v1233_v30 = vpop.f32.mrb[9].mxu1 }
 0x15b   : > { %v1186_v31 = vadd.f32 %v1185_v28, %v1184_v25  ;;  %v1234_v32 = vadd.f32 %v1233_v30, %v1232_v26  ;;  %v1187_v33 = vpop.f32.mrb[10].mxu0  ;;  %v1235_v34 = vpop.f32.mrb[10].mxu1  ;;  %v320_v25 = vld [vmem:[#allocation2 + $0xd0] sm:$0xff] }
 0x15c   : > { %v1188_v36 = vpop.f32.mrb[11].mxu0  ;;  %v1236_v38 = vpop.f32.mrb[11].mxu1 }
 0x15d   : > { %v811_v39 = vadd.f32 %v1186_v31, %v298_v27  ;;  %v827_v40 = vadd.f32 %v1234_v32, %v314_v29  ;;  %v1189_v41 = vadd.f32 %v1188_v36, %v1187_v33  ;;  %v1237_v42 = vadd.f32 %v1236_v38, %v1235_v34  ;;  %v305_v31 = vld [vmem:[#allocation2 + $0x58] sm:$0xff] }
 0x15e   : > { %v321_v33 = vld [vmem:[#allocation2 + $0xd8] sm:$0xff] }
 0x15f   : > { %843 = vst [vmem:[#allocation2 + $0x20] sm:$0xff] %v811_v39  ;;  %859 = vst [vmem:[#allocation2 + $0xa0] sm:$0xff] %v827_v40  ;;  %v812_v43 = vadd.f32 %v1189_v41, %v299_v35  ;;  %v828_v44 = vadd.f32 %v1237_v42, %v315_v37 }
 0x161   : > { %844 = vst [vmem:[#allocation2 + $0x28] sm:$0xff] %v812_v43  ;;  %860 = vst [vmem:[#allocation2 + $0xa8] sm:$0xff] %v828_v44  ;;  %v1190_v45 = vpop.f32.mrb[12].mxu0  ;;  %v1238_v46 = vpop.f32.mrb[12].mxu1  ;;  %v306_v43 = vld [vmem:[#allocation2 + $0x60] sm:$0xff] }
 0x162   : > { %v1191_v48 = vpop.f32.mrb[13].mxu0  ;;  %v1239_v50 = vpop.f32.mrb[13].mxu1 }
 0x163   : > { %v1192_v51 = vadd.f32 %v1191_v48, %v1190_v45  ;;  %v1240_v52 = vadd.f32 %v1239_v50, %v1238_v46  ;;  %v1193_v53 = vpop.f32.mrb[14].mxu0  ;;  %v1241_v54 = vpop.f32.mrb[14].mxu1  ;;  %v322_v45 = vld [vmem:[#allocation2 + $0xe0] sm:$0xff] }
 0x164   : > { %v1194_v56 = vpop.f32.mrb[15].mxu0  ;;  %v1242_v58 = vpop.f32.mrb[15].mxu1 }
 0x165   : > { %v813_v59 = vadd.f32 %v1192_v51, %v300_v47  ;;  %v829_v60 = vadd.f32 %v1240_v52, %v316_v49  ;;  %v1195_v61 = vadd.f32 %v1194_v56, %v1193_v53  ;;  %v1243_v62 = vadd.f32 %v1242_v58, %v1241_v54  ;;  %v307_v51 = vld [vmem:[#allocation2 + $0x68] sm:$0xff] }
 0x166   : > { %v323_v53 = vld [vmem:[#allocation2 + $0xe8] sm:$0xff] }
 0x167   : > { %845 = vst [vmem:[#allocation2 + $0x30] sm:$0xff] %v813_v59  ;;  %861 = vst [vmem:[#allocation2 + $0xb0] sm:$0xff] %v829_v60  ;;  %v814_v63 = vadd.f32 %v1195_v61, %v301_v55  ;;  %v830_v0 = vadd.f32 %v1243_v62, %v317_v57 }
 0x169   : > { %846 = vst [vmem:[#allocation2 + $0x38] sm:$0xff] %v814_v63  ;;  %862 = vst [vmem:[#allocation2 + $0xb8] sm:$0xff] %v830_v0  ;;  %v1196_v1 = vpop.f32.mrb[16].mxu0  ;;  %v1244_v2 = vpop.f32.mrb[16].mxu1  ;;  %v308_v63 = vld [vmem:[#allocation2 + $0x70] sm:$0xff] }
 0x16a   : > { %v1197_v4 = vpop.f32.mrb[17].mxu0  ;;  %v1245_v6 = vpop.f32.mrb[17].mxu1 }
 0x16b   : > { %v1198_v7 = vadd.f32 %v1197_v4, %v1196_v1  ;;  %v1246_v8 = vadd.f32 %v1245_v6, %v1244_v2  ;;  %v1199_v9 = vpop.f32.mrb[18].mxu0  ;;  %v1247_v10 = vpop.f32.mrb[18].mxu1  ;;  %v324_v1 = vld [vmem:[#allocation2 + $0xf0] sm:$0xff] }
 0x16c   : > { %v1200_v12 = vpop.f32.mrb[19].mxu0  ;;  %v1248_v14 = vpop.f32.mrb[19].mxu1 }
 0x16d   : > { %v815_v15 = vadd.f32 %v1198_v7, %v302_v3  ;;  %v831_v16 = vadd.f32 %v1246_v8, %v318_v5  ;;  %v1201_v17 = vadd.f32 %v1200_v12, %v1199_v9  ;;  %v1249_v18 = vadd.f32 %v1248_v14, %v1247_v10  ;;  %v309_v7 = vld [vmem:[#allocation2 + $0x78] sm:$0xff] }
 0x16e   : > { %v325_v9 = vld [vmem:[#allocation2 + $0xf8] sm:$0xff] }
 0x16f   : > { %847 = vst [vmem:[#allocation2 + $0x40] sm:$0xff] %v815_v15  ;;  %863 = vst [vmem:[#allocation2 + $0xc0] sm:$0xff] %v831_v16  ;;  %v816_v19 = vadd.f32 %v1201_v17, %v303_v11  ;;  %v832_v20 = vadd.f32 %v1249_v18, %v319_v13  ;;  %v876_v17 = vld [vmem:[#allocation2] sm:$0xff] (!%p1152_p0)  ;;  %v877_v18 = vld [vmem:[#allocation2 + $0x8] sm:$0xff] (!%p1152_p0) }
 0x171   : > { %848 = vst [vmem:[#allocation2 + $0x48] sm:$0xff] %v816_v19  ;;  %864 = vst [vmem:[#allocation2 + $0xc8] sm:$0xff] %v832_v20  ;;  %v1202_v21 = vpop.f32.mrb[20].mxu0  ;;  %v1250_v22 = vpop.f32.mrb[20].mxu1  ;;  %v1561_v19 = vld [vmem:[%s1617_s6] ss:$0 sm:$0xff] (!%p1152_p0) }
 0x172   : > { %v1203_v24 = vpop.f32.mrb[21].mxu0  ;;  %v1251_v26 = vpop.f32.mrb[21].mxu1  ;;  %v915_v20 = vadd.f32 (!%p1152_p0), %v1561_v19, %v876_v17  ;;  %v898_v17 = vld [vmem:[#allocation2 + $0xb0] sm:$0xff] (!%p1152_p0) }
 0x173   : > { %v1204_v27 = vadd.f32 %v1203_v24, %v1202_v21  ;;  %v1252_v28 = vadd.f32 %v1251_v26, %v1250_v22  ;;  %v1205_v29 = vpop.f32.mrb[22].mxu0  ;;  %v1253_v30 = vpop.f32.mrb[22].mxu1  ;;  %v916_v21 = vadd.f32 (!%p1152_p0), %v1561_v19, %v877_v18  ;;  %v878_v22 = vld [vmem:[#allocation2 + $0x10] sm:$0xff] (!%p1152_p0)  ;;  %v880_v24 = vld [vmem:[#allocation2 + $0x20] sm:$0xff] (!%p1152_p0)  ;;  %v899_v18 = vld [vmem:[#allocation2 + $0xb8] sm:$0xff] (!%p1152_p0) }
 0x174   : > { %v1206_v32 = vpop.f32.mrb[23].mxu0  ;;  %v1254_v34 = vpop.f32.mrb[23].mxu1 }
 0x175   : > { %v817_v35 = vadd.f32 %v1204_v27, %v304_v23  ;;  %v833_v36 = vadd.f32 %v1252_v28, %v320_v25  ;;  %v1207_v37 = vadd.f32 %v1206_v32, %v1205_v29  ;;  %v1255_v38 = vadd.f32 %v1254_v34, %v1253_v30  ;;  %v879_v23 = vld [vmem:[#allocation2 + $0x18] sm:$0xff] (!%p1152_p0)  ;;  %v881_v27 = vld [vmem:[#allocation2 + $0x28] sm:$0xff] (!%p1152_p0)  ;;  %v882_v29 = vld [vmem:[#allocation2 + $0x30] sm:$0xff] (!%p1152_p0) }
 0x176   : > { %v917_v25 = vadd.f32 (!%p1152_p0), %v1561_v19, %v878_v22  ;;  %v918_v26 = vadd.f32 (!%p1152_p0), %v1561_v19, %v879_v23  ;;  %v919_v28 = vadd.f32 (!%p1152_p0), %v1561_v19, %v880_v24  ;;  %v883_v30 = vld [vmem:[#allocation2 + $0x38] sm:$0xff] (!%p1152_p0)  ;;  %v948_v32 = vmax.f32 (!%p1152_p0), %v916_v21, 0.0  ;;  %v900_v24 = vld [vmem:[#allocation2 + $0xc0] sm:$0xff] (!%p1152_p0) }
 0x177   : > { %849 = vst [vmem:[#allocation2 + $0x50] sm:$0xff] %v817_v35  ;;  %865 = vst [vmem:[#allocation2 + $0xd0] sm:$0xff] %v833_v36  ;;  %v818_v39 = vadd.f32 %v1207_v37, %v305_v31  ;;  %v834_v40 = vadd.f32 %v1255_v38, %v321_v33  ;;  %v947_v31 = vmax.f32 (!%p1152_p0), %v915_v20, 0.0  ;;  %v920_v33 = vadd.f32 (!%p1152_p0), %v1561_v19, %v881_v27  ;;  %v884_v35 = vld [vmem:[#allocation2 + $0x40] sm:$0xff] (!%p1152_p0) }
 0x178   : > { %v921_v34 = vadd.f32 (!%p1152_p0), %v1561_v19, %v882_v29  ;;  %v885_v36 = vld [vmem:[#allocation2 + $0x48] sm:$0xff] (!%p1152_p0)  ;;  %v949_v38 = vmax.f32 (!%p1152_p0), %v917_v25, 0.0 }
 0x179   : > { %850 = vst [vmem:[#allocation2 + $0x58] sm:$0xff] %v818_v39  ;;  %866 = vst [vmem:[#allocation2 + $0xd8] sm:$0xff] %v834_v40  ;;  %v1208_v41 = vpop.f32.mrb[24].mxu0  ;;  %v1256_v42 = vpop.f32.mrb[24].mxu1  ;;  %v950_v39 = vmax.f32 (!%p1152_p0), %v918_v26, 0.0  ;;  %v951_v40 = vmax.f32 (!%p1152_p0), %v919_v28, 0.0 }
 0x17a   : > { %v1209_v44 = vpop.f32.mrb[25].mxu0  ;;  %v1257_v46 = vpop.f32.mrb[25].mxu1  ;;  %v901_v25 = vld [vmem:[#allocation2 + $0xc8] sm:$0xff] (!%p1152_p0) }
 0x17b   : > { %v1210_v47 = vadd.f32 %v1209_v44, %v1208_v41  ;;  %v1258_v48 = vadd.f32 %v1257_v46, %v1256_v42  ;;  %v1211_v49 = vpop.f32.mrb[26].mxu0  ;;  %v1259_v50 = vpop.f32.mrb[26].mxu1  ;;  %v922_v41 = vadd.f32 (!%p1152_p0), %v1561_v19, %v883_v30  ;;  %v979_v44 = vpack.c.bf16 (!%p1152_p0), %v948_v32, %v947_v31 }
 0x17c   : > { %v1212_v52 = vpop.f32.mrb[27].mxu0  ;;  %v1260_v54 = vpop.f32.mrb[27].mxu1  ;;  %v953_v46 = vmax.f32 (!%p1152_p0), %v921_v34, 0.0  ;;  %v938_v34 = vadd.f32 (!%p1152_p0), %v1561_v19, %v899_v18 }
 0x17d   : > { %v819_v55 = vadd.f32 %v1210_v47, %v306_v43  ;;  %v835_v56 = vadd.f32 %v1258_v48, %v322_v45  ;;  %v1213_v57 = vadd.f32 %v1212_v52, %v1211_v49  ;;  %v1261_v58 = vadd.f32 %v1260_v54, %v1259_v50  ;;  %995 = vst [vmem:[%s1504_s15] sm:$0xff] (!%p1152_p0), %v979_v44 }
 0x17e   : > { %v886_v37 = vld [vmem:[#allocation2 + $0x50] sm:$0xff] (!%p1152_p0)  ;;  %v952_v45 = vmax.f32 (!%p1152_p0), %v920_v33, 0.0  ;;  %v923_v47 = vadd.f32 (!%p1152_p0), %v1561_v19, %v884_v35  ;;  %v980_v49 = vpack.c.bf16 (!%p1152_p0), %v950_v39, %v949_v38  ;;  %v954_v50 = vmax.f32 (!%p1152_p0), %v922_v41, 0.0 }
 0x17f   : > { %851 = vst [vmem:[#allocation2 + $0x60] sm:$0xff] %v819_v55  ;;  %867 = vst [vmem:[#allocation2 + $0xe0] sm:$0xff] %v835_v56  ;;  %v820_v59 = vadd.f32 %v1213_v57, %v307_v51  ;;  %v836_v60 = vadd.f32 %v1261_v58, %v323_v53  ;;  %v924_v51 = vadd.f32 (!%p1152_p0), %v1561_v19, %v885_v36  ;;  %v902_v30 = vld [vmem:[#allocation2 + $0xd0] sm:$0xff] (!%p1152_p0)  ;;  %v970_v44 = vmax.f32 (!%p1152_p0), %v938_v34, 0.0 }
 0x180   : > { %v887_v42 = vld [vmem:[#allocation2 + $0x58] sm:$0xff] (!%p1152_p0)  ;;  %v925_v52 = vadd.f32 (!%p1152_p0), %v1561_v19, %v886_v37  ;;  %v981_v55 = vpack.c.bf16 (!%p1152_p0), %v952_v45, %v951_v40  ;;  %v955_v56 = vmax.f32 (!%p1152_p0), %v923_v47, 0.0  ;;  %996 = vst [vmem:[%s1504_s15 + $0x8] sm:$0xff] (!%p1152_p0), %v980_v49  ;;  %v937_v33 = vadd.f32 (!%p1152_p0), %v1561_v19, %v898_v17 }
 0x181   : > { %852 = vst [vmem:[#allocation2 + $0x68] sm:$0xff] %v820_v59  ;;  %868 = vst [vmem:[#allocation2 + $0xe8] sm:$0xff] %v836_v60  ;;  %v1214_v61 = vpop.f32.mrb[28].mxu0  ;;  %v1262_v62 = vpop.f32.mrb[28].mxu1  ;;  %v926_v57 = vadd.f32 (!%p1152_p0), %v1561_v19, %v887_v42  ;;  %v892_v59 = vld [vmem:[#allocation2 + $0x80] sm:$0xff] (!%p1152_p0)  ;;  %v893_v60 = vld [vmem:[#allocation2 + $0x88] sm:$0xff] (!%p1152_p0)  ;;  %v939_v38 = vadd.f32 (!%p1152_p0), %v1561_v19, %v900_v24  ;;  %v940_v39 = vadd.f32 (!%p1152_p0), %v1561_v19, %v901_v25 }
 0x182   : > { %v1215_v0 = vpop.f32.mrb[29].mxu0  ;;  %v1263_v2 = vpop.f32.mrb[29].mxu1  ;;  %997 = vst [vmem:[%s1504_s15 + $0x10] sm:$0xff] (!%p1152_p0), %v981_v55  ;;  %v903_v35 = vld [vmem:[#allocation2 + $0xd8] sm:$0xff] (!%p1152_p0)  ;;  %v941_v45 = vadd.f32 (!%p1152_p0), %v1561_v19, %v902_v30 }
 0x183   : > { %v1216_v3 = vadd.f32 %v1215_v0, %v1214_v61  ;;  %v1264_v4 = vadd.f32 %v1263_v2, %v1262_v62  ;;  %v1217_v5 = vpop.f32.mrb[30].mxu0  ;;  %v1265_v6 = vpop.f32.mrb[30].mxu1  ;;  %875 = sbr.rel (%p1152_p0) target bundleno = 409 (0x199), region = 40  ;;  %v982_v61 = vpack.c.bf16 (!%p1152_p0), %v954_v50, %v953_v46  ;;  %v956_v62 = vmax.f32 (!%p1152_p0), %v924_v51, 0.0 }
 0x184   : > { %v1218_v8 = vpop.f32.mrb[31].mxu0  ;;  %v1266_v10 = vpop.f32.mrb[31].mxu1  ;;  %v958_v2 = vmax.f32 (!%p1152_p0), %v926_v57, 0.0  ;;  %v971_v49 = vmax.f32 (!%p1152_p0), %v939_v38, 0.0  ;;  %v972_v50 = vmax.f32 (!%p1152_p0), %v940_v39, 0.0  ;;  %v942_v51 = vadd.f32 (!%p1152_p0), %v1561_v19, %v903_v35 }
 0x185   : > { %v821_v11 = vadd.f32 %v1216_v3, %v308_v63  ;;  %v837_v12 = vadd.f32 %v1264_v4, %v324_v1  ;;  %v1219_v13 = vadd.f32 %v1218_v8, %v1217_v5  ;;  %v1267_v14 = vadd.f32 %v1266_v10, %v1265_v6  ;;  %v894_v1 = vld [vmem:[#allocation2 + $0x90] sm:$0xff] (!%p1152_p0)  ;;  %v895_v6 = vld [vmem:[#allocation2 + $0x98] sm:$0xff] (!%p1152_p0)  ;;  %998 = vst [vmem:[%s1504_s15 + $0x18] sm:$0xff] (!%p1152_p0), %v982_v61 }
 0x186   : > { %v888_v43 = vld [vmem:[#allocation2 + $0x60] sm:$0xff] (!%p1152_p0)  ;;  %v957_v63 = vmax.f32 (!%p1152_p0), %v925_v52, 0.0  ;;  %v932_v10 = vadd.f32 (!%p1152_p0), %v1561_v19, %v893_v60  ;;  %v934_v23 = vadd.f32 (!%p1152_p0), %v1561_v19, %v895_v6  ;;  %v974_v57 = vmax.f32 (!%p1152_p0), %v942_v51, 0.0 }
 0x187   : > { %853 = vst [vmem:[#allocation2 + $0x70] sm:$0xff] %v821_v11  ;;  %869 = vst [vmem:[#allocation2 + $0xf0] sm:$0xff] %v837_v12  ;;  %v822_v15 = vadd.f32 %v1219_v13, %v309_v7  ;;  %v838_v16 = vadd.f32 %v1267_v14, %v325_v9  ;;  %v927_v58 = vadd.f32 (!%p1152_p0), %v1561_v19, %v888_v43  ;;  %v896_v11 = vld [vmem:[#allocation2 + $0xa0] sm:$0xff] (!%p1152_p0)  ;;  %v897_v12 = vld [vmem:[#allocation2 + $0xa8] sm:$0xff] (!%p1152_p0)  ;;  %v969_v43 = vmax.f32 (!%p1152_p0), %v937_v33, 0.0 }
 0x188   : > { %v889_v48 = vld [vmem:[#allocation2 + $0x68] sm:$0xff] (!%p1152_p0)  ;;  %v983_v7 = vpack.c.bf16 (!%p1152_p0), %v956_v62, %v955_v56  ;;  %v931_v9 = vadd.f32 (!%p1152_p0), %v1561_v19, %v892_v59  ;;  %v984_v13 = vpack.c.bf16 (!%p1152_p0), %v958_v2, %v957_v63  ;;  %v964_v22 = vmax.f32 (!%p1152_p0), %v932_v10, 0.0  ;;  %v904_v40 = vld [vmem:[#allocation2 + $0xe0] sm:$0xff] (!%p1152_p0) }
 0x189   : > { %854 = vst [vmem:[#allocation2 + $0x78] sm:$0xff] %v822_v15  ;;  %870 = vst [vmem:[#allocation2 + $0xf8] sm:$0xff] %v838_v16  ;;  %v928_v0 = vadd.f32 (!%p1152_p0), %v1561_v19, %v889_v48  ;;  %v959_v3 = vmax.f32 (!%p1152_p0), %v927_v58, 0.0  ;;  %v933_v16 = vadd.f32 (!%p1152_p0), %v1561_v19, %v894_v1  ;;  %v935_v28 = vadd.f32 (!%p1152_p0), %v1561_v19, %v896_v11  ;;  %v905_v41 = vld [vmem:[#allocation2 + $0xe8] sm:$0xff] (!%p1152_p0) }
 0x18a   : > { %999 = vst [vmem:[%s1504_s15 + $0x20] sm:$0xff] %v983_v7  ;;  %v963_v21 = vmax.f32 %v931_v9, 0.0  ;;  %1000 = vst [vmem:[%s1504_s15 + $0x28] sm:$0xff] %v984_v13  ;;  %v936_v29 = vadd.f32 %v1561_v19, %v897_v12  ;;  %v966_v32 = vmax.f32 %v934_v23, 0.0  ;;  %v990_v52 = vpack.c.bf16 %v970_v44, %v969_v43 }
 0x18b   : > { %v960_v8 = vmax.f32 %v928_v0, 0.0  ;;  %v965_v27 = vmax.f32 %v933_v16, 0.0  ;;  %v967_v36 = vmax.f32 %v935_v28, 0.0  ;;  %v944_v55 = vadd.f32 %v1561_v19, %v905_v41 }
 0x18c   : > { %v987_v31 = vpack.c.bf16 %v964_v22, %v963_v21  ;;  %v968_v37 = vmax.f32 %v936_v29, 0.0  ;;  %v991_v56 = vpack.c.bf16 %v972_v50, %v971_v49  ;;  %1006 = vst [vmem:[%s1504_s15 + $0x58] sm:$0xff] %v990_v52 }
 0x18d   : > { %v985_v20 = vpack.c.bf16 %v960_v8, %v959_v3  ;;  %v988_v42 = vpack.c.bf16 %v966_v32, %v965_v27  ;;  %v976_v61 = vmax.f32 %v944_v55, 0.0 }
 0x18e   : > { %v890_v53 = vld [vmem:[#allocation2 + $0x70] sm:$0xff]  ;;  %1003 = vst [vmem:[%s1504_s15 + $0x40] sm:$0xff] %v987_v31  ;;  %v989_v48 = vpack.c.bf16 %v968_v37, %v967_v36  ;;  %1007 = vst [vmem:[%s1504_s15 + $0x60] sm:$0xff] %v991_v56 }
 0x18f   : > { %v929_v4 = vadd.f32 %v1561_v19, %v890_v53  ;;  %1001 = vst [vmem:[%s1504_s15 + $0x30] sm:$0xff] %v985_v20  ;;  %v906_v46 = vld [vmem:[#allocation2 + $0xf0] sm:$0xff]  ;;  %1004 = vst [vmem:[%s1504_s15 + $0x48] sm:$0xff] %v988_v42  ;;  %v973_v53 = vmax.f32 %v941_v45, 0.0 }
 0x190   : > { %v891_v54 = vld [vmem:[#allocation2 + $0x78] sm:$0xff]  ;;  %1005 = vst [vmem:[%s1504_s15 + $0x50] sm:$0xff] %v989_v48  ;;  %v945_v58 = vadd.f32 %v1561_v19, %v906_v46 }
 0x191   : > { %v930_v5 = vadd.f32 %v1561_v19, %v891_v54  ;;  %v961_v14 = vmax.f32 %v929_v4, 0.0  ;;  %v907_v47 = vld [vmem:[#allocation2 + $0xf8] sm:$0xff]  ;;  %v943_v54 = vadd.f32 %v1561_v19, %v904_v40  ;;  %v992_v62 = vpack.c.bf16 %v974_v57, %v973_v53 }
 0x192   : > { %v946_v59 = vadd.f32 %v1561_v19, %v907_v47  ;;  %v977_v63 = vmax.f32 %v945_v58, 0.0 }
 0x193   : > { %v962_v15 = vmax.f32 %v930_v5, 0.0  ;;  %v975_v60 = vmax.f32 %v943_v54, 0.0  ;;  %1008 = vst [vmem:[%s1504_s15 + $0x68] sm:$0xff] %v992_v62 }
 0x194   : > { %v978_v0 = vmax.f32 %v946_v59, 0.0 }
 0x195   : > { %v986_v26 = vpack.c.bf16 %v962_v15, %v961_v14  ;;  %v993_v1 = vpack.c.bf16 %v976_v61, %v975_v60 }
 0x196   : > { %v994_v2 = vpack.c.bf16 %v978_v0, %v977_v63 }
 0x197   : > { %1002 = vst [vmem:[%s1504_s15 + $0x38] sm:$0xff] %v986_v26  ;;  %1009 = vst [vmem:[%s1504_s15 + $0x70] sm:$0xff] %v993_v1 }
 0x198   : > { %1010 = vst [vmem:[%s1504_s15 + $0x78] sm:$0xff] %v994_v2 }
 0x199 PF: > { %s35_s3 = sadd.s32 1, %s1417_s3  }
 0x19a   : > { %p32_p1 = scmp.ge.s32.totalorder %s35_s3, 6  }
 0x19c   :  { %34 = sbr.rel (!%p32_p1) target bundleno = 47 (0x2f), region = 73 }

</bundles_post_ra>
